<compile_context>
chip_gen: v7x
topology: tpu7x:2x2x1
jax: 0.10.0
libtpu: 0.0.40
codegen_flags: <defaults>
</compile_context>

<pallas_src>
import jax
import jax.numpy as jnp
from jax.experimental import pallas as pl
from jax.experimental.pallas import tpu as pltpu


# ---------------------------------------------------------------------------
# Kernel 1: the recurrence. Single grid step; the T loop lives inside.
# ---------------------------------------------------------------------------
def rnn_recurrence_kernel(ids_ref,   # SMEM (T*B,) int32 token ids, time-major flat
                          wih_ref,   # VMEM (V, H) = W_ih^T   (row-gathered)
                          whh_ref,   # VMEM (H, H) = W_hh^T
                          b_ref,     # VMEM (1, H) = b_ih + b_hh
                          h0_ref,    # VMEM (B, H) initial hidden state
                          yh_ref):   # VMEM (T, B, H) all hidden states (output)
    T, B, _ = yh_ref.shape
    whh = whh_ref[...]
    bias = b_ref[...]

    def step(t, h_prev):
        # one_hot(x_t) @ W_ih^T  ==  gather of B rows of W_ih^T by token id.
        rows = [wih_ref[pl.ds(ids_ref[t * B + b], 1), :] for b in range(B)]
        x_emb = jnp.concatenate(rows, axis=0)                       # (B, H)
        h_new = jnp.tanh(
            x_emb
            + jnp.dot(h_prev, whh, preferred_element_type=jnp.float32)
            + bias
        )
        yh_ref[t] = h_new                                           # store step t
        return h_new

    # Seed the carry once from h0 (no per-step pl.when); unroll for LLO scheduling.
    jax.lax.fori_loop(0, T, step, h0_ref[...], unroll=True)


# ---------------------------------------------------------------------------
# Kernel 2: batched output projection over all T*B rows (parallel, lane-dense).
# ---------------------------------------------------------------------------
def projection_kernel(h_ref, w_ref, b_ref, o_ref):
    o_ref[...] = (
        jnp.dot(h_ref[...], w_ref[...], preferred_element_type=jnp.float32)
        + b_ref[...]
    ).astype(o_ref.dtype)


def _pick_tile(n, target):
    """`target` if it evenly tiles n, else the full dimension (small-shape demo)."""
    return target if (n >= target and n % target == 0) else n


def rnn_model_forward(inputs, state, params, *, projection_dtype=jnp.float32):
    """Mirrors RNNModel.forward.

    inputs: (B, T) int32 token ids.
    state:  (1, B, H) float32 initial hidden state.
    Returns (output (T*B, V), new_state (1, B, H)).
    """
    W_ih, W_hh, b_ih, b_hh, W_out, b_out = params
    H, V = W_ih.shape
    B, T = inputs.shape

    # ---- stage 1: recurrence (sequential, one kernel invocation) ----
    ids = inputs.T.reshape(-1).astype(jnp.int32)        # (T*B,) time-major, SMEM-friendly 1-D
    h0 = state.reshape(B, H).astype(jnp.float32)
    wih_t = W_ih.T.astype(jnp.float32)                  # (V, H)
    whh_t = W_hh.T.astype(jnp.float32)                  # (H, H)
    b_comb = (b_ih + b_hh).reshape(1, H).astype(jnp.float32)

    grid_spec = pltpu.PrefetchScalarGridSpec(
        num_scalar_prefetch=1,                          # token ids -> SMEM
        grid=(1,),
        in_specs=[
            pl.BlockSpec((V, H), lambda i, _ids: (0, 0)),   # W_ih^T
            pl.BlockSpec((H, H), lambda i, _ids: (0, 0)),   # W_hh^T
            pl.BlockSpec((1, H), lambda i, _ids: (0, 0)),   # b_ih + b_hh
            pl.BlockSpec((B, H), lambda i, _ids: (0, 0)),   # h0
        ],
        out_specs=pl.BlockSpec((T, B, H), lambda i, _ids: (0, 0, 0)),
    )

    y_h = pl.pallas_call(
        rnn_recurrence_kernel,
        grid_spec=grid_spec,
        out_shape=jax.ShapeDtypeStruct((T, B, H), jnp.float32),
        compiler_params=pltpu.CompilerParams(
            dimension_semantics=("arbitrary",),         # time is sequential
            vmem_limit_bytes=32 * 1024 * 1024),
    )(ids, wih_t, whh_t, b_comb, h0)

    new_state = y_h[T - 1].reshape(1, B, H)             # final hidden state

    # ---- stage 2: output projection, batched over all T*B rows ----
    M = T * B
    h_flat = y_h.reshape(M, H).astype(projection_dtype)
    wout_t = W_out.T.astype(projection_dtype)           # (H, V)
    bout = b_out.reshape(1, V).astype(jnp.float32)

    tm = _pick_tile(M, 256)                             # multiples of 128 keep v5e's MXU fed
    tn = _pick_tile(V, 512)

    output = pl.pallas_call(
        projection_kernel,
        grid=(M // tm, V // tn),
        in_specs=[
            pl.BlockSpec((tm, H), lambda i, j: (i, 0)),
            pl.BlockSpec((H, tn), lambda i, j: (0, j)),
            pl.BlockSpec((1, tn), lambda i, j: (0, j)),
        ],
        out_specs=pl.BlockSpec((tm, tn), lambda i, j: (i, j)),
        out_shape=jax.ShapeDtypeStruct((M, V), jnp.float32),
        compiler_params=pltpu.CompilerParams(
            dimension_semantics=("parallel", "parallel"),  # megacore-shardable on v7x
            vmem_limit_bytes=32 * 1024 * 1024),
    )(h_flat, wout_t, bout)

    return output, new_state


def rnn_model_reference(inputs, state, params):
    """Pure-JAX reference with identical semantics, for verification."""
    W_ih, W_hh, b_ih, b_hh, W_out, b_out = params
    H, V = W_ih.shape
    B, T = inputs.shape
    X = jax.nn.one_hot(inputs.T, V, dtype=jnp.float32)   # (T, B, V)
    h = state.reshape(B, H)

    def step(h, x_t):
        h_new = jnp.tanh(x_t @ W_ih.T + b_ih + h @ W_hh.T + b_hh)
        return h_new, h_new

    h_final, Y = jax.lax.scan(step, h, X)                 # Y: (T, B, H)
    out = Y.reshape(-1, H) @ W_out.T + b_out
    return out, h_final.reshape(1, B, H)


if __name__ == "__main__":
    # Small shapes consistent with the module (vocab-sized one-hot input,
    # single-layer unidirectional tanh RNN, Linear(H -> vocab)).
    VOCAB = 128   # vocab_size
    H = 128       # hidden_size (module default is 512; kept small & lane-aligned)
    B = 8         # batch_size
    T = 8         # sequence length

    key = jax.random.PRNGKey(0)
    k_in, k_ih, k_hh, k_bih, k_bhh, k_wo, k_bo = jax.random.split(key, 7)

    # Deterministic parameter init, PyTorch-style U(-1/sqrt(H), 1/sqrt(H)).
    bound = 1.0 / jnp.sqrt(jnp.float32(H))
    W_ih = jax.random.uniform(k_ih, (H, VOCAB), jnp.float32, -bound, bound)
    W_hh = jax.random.uniform(k_hh, (H, H), jnp.float32, -bound, bound)
    b_ih = jax.random.uniform(k_bih, (H,), jnp.float32, -bound, bound)
    b_hh = jax.random.uniform(k_bhh, (H,), jnp.float32, -bound, bound)
    W_out = jax.random.uniform(k_wo, (VOCAB, H), jnp.float32, -bound, bound)
    b_out = jax.random.uniform(k_bo, (VOCAB,), jnp.float32, -bound, bound)
    params = (W_ih, W_hh, b_ih, b_hh, W_out, b_out)

    inputs = jax.random.randint(k_in, (B, T), 0, VOCAB, dtype=jnp.int32)
    state = jnp.zeros((1, B, H), dtype=jnp.float32)       # begin_state()

    ref_out, ref_state = rnn_model_reference(inputs, state, params)

    # f32 path (directly comparable to the reference).
    out, new_state = rnn_model_forward(inputs, state, params)
    out = jax.block_until_ready(out)
    new_state = jax.block_until_ready(new_state)
    assert out.shape == (T * B, VOCAB)
    assert new_state.shape == (1, B, H)
    assert jnp.allclose(out, ref_out, atol=1e-4, rtol=1e-4)
    assert jnp.allclose(new_state, ref_state, atol=1e-4, rtol=1e-4)

    # bf16-input projection path (MXU-native on v6e/v7x; f32 accumulation).
    out_bf16, state_bf16 = rnn_model_forward(
        inputs, state, params, projection_dtype=jnp.bfloat16)
    out_bf16 = jax.block_until_ready(out_bf16)
    assert jnp.allclose(out_bf16, ref_out, atol=5e-2, rtol=5e-2)
    assert jnp.allclose(state_bf16, ref_state, atol=1e-4, rtol=1e-4)

    print("KERNEL_OK")
</pallas_src>

<mosaic_0001>
module attributes {stable_mosaic.version = 11 : i64} {
  func.func @rnn_recurrence_kernel(%arg0: i32, %arg1: memref<64xi32, #tpu.memory_space<smem>>, %arg2: memref<128x128xf32, #tpu.memory_space<vmem>>, %arg3: memref<128x128xf32, #tpu.memory_space<vmem>>, %arg4: memref<1x128xf32, #tpu.memory_space<vmem>>, %arg5: memref<8x128xf32, #tpu.memory_space<vmem>>, %arg6: memref<8x8x128xf32, #tpu.memory_space<vmem>>) attributes {dimension_semantics = [#tpu.dimension_semantics<arbitrary>], iteration_bounds = array<i64: 1>, scalar_prefetch = 1 : i64, scratch_operands = 0 : i64, tpu.core_type = #tpu.core_type<tc>, window_params = [{pipeline_mode = #tpu.pipeline_mode<synchronous>, transform_indices = @transform_0, window_bounds = array<i64: 128, 128>}, {pipeline_mode = #tpu.pipeline_mode<synchronous>, transform_indices = @transform_1, window_bounds = array<i64: 128, 128>}, {pipeline_mode = #tpu.pipeline_mode<synchronous>, transform_indices = @transform_2, window_bounds = array<i64: 1, 128>}, {pipeline_mode = #tpu.pipeline_mode<synchronous>, transform_indices = @transform_3, window_bounds = array<i64: 8, 128>}, {pipeline_mode = #tpu.pipeline_mode<synchronous>, transform_indices = @transform_4, window_bounds = array<i64: 8, 8, 128>}]} {
    %c0 = arith.constant 0 : index
    %c0_0 = arith.constant 0 : index
    %0 = vector.load %arg3[%c0, %c0_0] : memref<128x128xf32, #tpu.memory_space<vmem>>, vector<128x128xf32>
    %c0_1 = arith.constant 0 : index
    %c0_2 = arith.constant 0 : index
    %1 = vector.load %arg4[%c0_1, %c0_2] : memref<1x128xf32, #tpu.memory_space<vmem>>, vector<1x128xf32>
    %c0_3 = arith.constant 0 : index
    %c0_4 = arith.constant 0 : index
    %2 = vector.load %arg5[%c0_3, %c0_4] : memref<8x128xf32, #tpu.memory_space<vmem>>, vector<8x128xf32>
    %c0_i32 = arith.constant 0 : i32
    %c8_i32 = arith.constant 8 : i32
    %3 = arith.muli %c0_i32, %c8_i32 : i32
    %c0_i32_5 = arith.constant 0 : i32
    %4 = arith.addi %3, %c0_i32_5 : i32
    %5 = arith.index_cast %4 : i32 to index
    %6 = memref.load %arg1[%5] : memref<64xi32, #tpu.memory_space<smem>>
    %7 = arith.index_cast %6 : i32 to index
    %c0_6 = arith.constant 0 : index
    %8 = vector.load %arg2[%7, %c0_6] : memref<128x128xf32, #tpu.memory_space<vmem>>, vector<1x128xf32>
    %c8_i32_7 = arith.constant 8 : i32
    %9 = arith.muli %c0_i32, %c8_i32_7 : i32
    %c1_i32 = arith.constant 1 : i32
    %10 = arith.addi %9, %c1_i32 : i32
    %11 = arith.index_cast %10 : i32 to index
    %12 = memref.load %arg1[%11] : memref<64xi32, #tpu.memory_space<smem>>
    %13 = arith.index_cast %12 : i32 to index
    %c0_8 = arith.constant 0 : index
    %14 = vector.load %arg2[%13, %c0_8] : memref<128x128xf32, #tpu.memory_space<vmem>>, vector<1x128xf32>
    %c8_i32_9 = arith.constant 8 : i32
    %15 = arith.muli %c0_i32, %c8_i32_9 : i32
    %c2_i32 = arith.constant 2 : i32
    %16 = arith.addi %15, %c2_i32 : i32
    %17 = arith.index_cast %16 : i32 to index
    %18 = memref.load %arg1[%17] : memref<64xi32, #tpu.memory_space<smem>>
    %19 = arith.index_cast %18 : i32 to index
    %c0_10 = arith.constant 0 : index
    %20 = vector.load %arg2[%19, %c0_10] : memref<128x128xf32, #tpu.memory_space<vmem>>, vector<1x128xf32>
    %c8_i32_11 = arith.constant 8 : i32
    %21 = arith.muli %c0_i32, %c8_i32_11 : i32
    %c3_i32 = arith.constant 3 : i32
    %22 = arith.addi %21, %c3_i32 : i32
    %23 = arith.index_cast %22 : i32 to index
    %24 = memref.load %arg1[%23] : memref<64xi32, #tpu.memory_space<smem>>
    %25 = arith.index_cast %24 : i32 to index
    %c0_12 = arith.constant 0 : index
    %26 = vector.load %arg2[%25, %c0_12] : memref<128x128xf32, #tpu.memory_space<vmem>>, vector<1x128xf32>
    %c8_i32_13 = arith.constant 8 : i32
    %27 = arith.muli %c0_i32, %c8_i32_13 : i32
    %c4_i32 = arith.constant 4 : i32
    %28 = arith.addi %27, %c4_i32 : i32
    %29 = arith.index_cast %28 : i32 to index
    %30 = memref.load %arg1[%29] : memref<64xi32, #tpu.memory_space<smem>>
    %31 = arith.index_cast %30 : i32 to index
    %c0_14 = arith.constant 0 : index
    %32 = vector.load %arg2[%31, %c0_14] : memref<128x128xf32, #tpu.memory_space<vmem>>, vector<1x128xf32>
    %c8_i32_15 = arith.constant 8 : i32
    %33 = arith.muli %c0_i32, %c8_i32_15 : i32
    %c5_i32 = arith.constant 5 : i32
    %34 = arith.addi %33, %c5_i32 : i32
    %35 = arith.index_cast %34 : i32 to index
    %36 = memref.load %arg1[%35] : memref<64xi32, #tpu.memory_space<smem>>
    %37 = arith.index_cast %36 : i32 to index
    %c0_16 = arith.constant 0 : index
    %38 = vector.load %arg2[%37, %c0_16] : memref<128x128xf32, #tpu.memory_space<vmem>>, vector<1x128xf32>
    %c8_i32_17 = arith.constant 8 : i32
    %39 = arith.muli %c0_i32, %c8_i32_17 : i32
    %c6_i32 = arith.constant 6 : i32
    %40 = arith.addi %39, %c6_i32 : i32
    %41 = arith.index_cast %40 : i32 to index
    %42 = memref.load %arg1[%41] : memref<64xi32, #tpu.memory_space<smem>>
    %43 = arith.index_cast %42 : i32 to index
    %c0_18 = arith.constant 0 : index
    %44 = vector.load %arg2[%43, %c0_18] : memref<128x128xf32, #tpu.memory_space<vmem>>, vector<1x128xf32>
    %c8_i32_19 = arith.constant 8 : i32
    %45 = arith.muli %c0_i32, %c8_i32_19 : i32
    %c7_i32 = arith.constant 7 : i32
    %46 = arith.addi %45, %c7_i32 : i32
    %47 = arith.index_cast %46 : i32 to index
    %48 = memref.load %arg1[%47] : memref<64xi32, #tpu.memory_space<smem>>
    %49 = arith.index_cast %48 : i32 to index
    %c0_20 = arith.constant 0 : index
    %50 = vector.load %arg2[%49, %c0_20] : memref<128x128xf32, #tpu.memory_space<vmem>>, vector<1x128xf32>
    %51 = tpu.concatenate %8, %14, %20, %26, %32, %38, %44, %50 in 0 : vector<1x128xf32>, vector<1x128xf32>, vector<1x128xf32>, vector<1x128xf32>, vector<1x128xf32>, vector<1x128xf32>, vector<1x128xf32>, vector<1x128xf32> -> vector<8x128xf32>
    %cst = arith.constant dense<0.000000e+00> : vector<8x128xf32>
    %52 = tpu.matmul %2, %0, %cst {dimension_numbers = #tpu.dot_dimension_numbers<[1], [0], [0], [1], [0, 0, 1, 1], [], []>} : vector<8x128xf32>, vector<128x128xf32>, vector<8x128xf32> -> vector<8x128xf32>
    %53 = arith.addf %51, %52 : vector<8x128xf32>
    %54 = vector.broadcast %1 : vector<1x128xf32> to vector<8x128xf32>
    %55 = arith.addf %53, %54 : vector<8x128xf32>
    %56 = math.tanh %55 : vector<8x128xf32>
    %57 = arith.index_cast %c0_i32 : i32 to index
    %c0_21 = arith.constant 0 : index
    %c0_22 = arith.constant 0 : index
    %58 = vector.load %arg6[%57, %c0_21, %c0_22] : memref<8x8x128xf32, #tpu.memory_space<vmem>>, vector<1x8x128xf32>
    %59 = vector.shape_cast %58 : vector<1x8x128xf32> to vector<8x128xf32>
    %60 = vector.shape_cast %56 : vector<8x128xf32> to vector<1x8x128xf32>
    tpu.vector_store %arg6[%57, %c0_21, %c0_22], %60 {strides = array<i32>} : memref<8x8x128xf32, #tpu.memory_space<vmem>>, vector<1x8x128xf32>,
    %c1_i32_23 = arith.constant 1 : i32
    %c8_i32_24 = arith.constant 8 : i32
    %61 = arith.muli %c1_i32_23, %c8_i32_24 : i32
    %c0_i32_25 = arith.constant 0 : i32
    %62 = arith.addi %61, %c0_i32_25 : i32
    %63 = arith.index_cast %62 : i32 to index
    %64 = memref.load %arg1[%63] : memref<64xi32, #tpu.memory_space<smem>>
    %65 = arith.index_cast %64 : i32 to index
    %c0_26 = arith.constant 0 : index
    %66 = vector.load %arg2[%65, %c0_26] : memref<128x128xf32, #tpu.memory_space<vmem>>, vector<1x128xf32>
    %c8_i32_27 = arith.constant 8 : i32
    %67 = arith.muli %c1_i32_23, %c8_i32_27 : i32
    %c1_i32_28 = arith.constant 1 : i32
    %68 = arith.addi %67, %c1_i32_28 : i32
    %69 = arith.index_cast %68 : i32 to index
    %70 = memref.load %arg1[%69] : memref<64xi32, #tpu.memory_space<smem>>
    %71 = arith.index_cast %70 : i32 to index
    %c0_29 = arith.constant 0 : index
    %72 = vector.load %arg2[%71, %c0_29] : memref<128x128xf32, #tpu.memory_space<vmem>>, vector<1x128xf32>
    %c8_i32_30 = arith.constant 8 : i32
    %73 = arith.muli %c1_i32_23, %c8_i32_30 : i32
    %c2_i32_31 = arith.constant 2 : i32
    %74 = arith.addi %73, %c2_i32_31 : i32
    %75 = arith.index_cast %74 : i32 to index
    %76 = memref.load %arg1[%75] : memref<64xi32, #tpu.memory_space<smem>>
    %77 = arith.index_cast %76 : i32 to index
    %c0_32 = arith.constant 0 : index
    %78 = vector.load %arg2[%77, %c0_32] : memref<128x128xf32, #tpu.memory_space<vmem>>, vector<1x128xf32>
    %c8_i32_33 = arith.constant 8 : i32
    %79 = arith.muli %c1_i32_23, %c8_i32_33 : i32
    %c3_i32_34 = arith.constant 3 : i32
    %80 = arith.addi %79, %c3_i32_34 : i32
    %81 = arith.index_cast %80 : i32 to index
    %82 = memref.load %arg1[%81] : memref<64xi32, #tpu.memory_space<smem>>
    %83 = arith.index_cast %82 : i32 to index
    %c0_35 = arith.constant 0 : index
    %84 = vector.load %arg2[%83, %c0_35] : memref<128x128xf32, #tpu.memory_space<vmem>>, vector<1x128xf32>
    %c8_i32_36 = arith.constant 8 : i32
    %85 = arith.muli %c1_i32_23, %c8_i32_36 : i32
    %c4_i32_37 = arith.constant 4 : i32
    %86 = arith.addi %85, %c4_i32_37 : i32
    %87 = arith.index_cast %86 : i32 to index
    %88 = memref.load %arg1[%87] : memref<64xi32, #tpu.memory_space<smem>>
    %89 = arith.index_cast %88 : i32 to index
    %c0_38 = arith.constant 0 : index
    %90 = vector.load %arg2[%89, %c0_38] : memref<128x128xf32, #tpu.memory_space<vmem>>, vector<1x128xf32>
    %c8_i32_39 = arith.constant 8 : i32
    %91 = arith.muli %c1_i32_23, %c8_i32_39 : i32
    %c5_i32_40 = arith.constant 5 : i32
    %92 = arith.addi %91, %c5_i32_40 : i32
    %93 = arith.index_cast %92 : i32 to index
    %94 = memref.load %arg1[%93] : memref<64xi32, #tpu.memory_space<smem>>
    %95 = arith.index_cast %94 : i32 to index
    %c0_41 = arith.constant 0 : index
    %96 = vector.load %arg2[%95, %c0_41] : memref<128x128xf32, #tpu.memory_space<vmem>>, vector<1x128xf32>
    %c8_i32_42 = arith.constant 8 : i32
    %97 = arith.muli %c1_i32_23, %c8_i32_42 : i32
    %c6_i32_43 = arith.constant 6 : i32
    %98 = arith.addi %97, %c6_i32_43 : i32
    %99 = arith.index_cast %98 : i32 to index
    %100 = memref.load %arg1[%99] : memref<64xi32, #tpu.memory_space<smem>>
    %101 = arith.index_cast %100 : i32 to index
    %c0_44 = arith.constant 0 : index
    %102 = vector.load %arg2[%101, %c0_44] : memref<128x128xf32, #tpu.memory_space<vmem>>, vector<1x128xf32>
    %c8_i32_45 = arith.constant 8 : i32
    %103 = arith.muli %c1_i32_23, %c8_i32_45 : i32
    %c7_i32_46 = arith.constant 7 : i32
    %104 = arith.addi %103, %c7_i32_46 : i32
    %105 = arith.index_cast %104 : i32 to index
    %106 = memref.load %arg1[%105] : memref<64xi32, #tpu.memory_space<smem>>
    %107 = arith.index_cast %106 : i32 to index
    %c0_47 = arith.constant 0 : index
    %108 = vector.load %arg2[%107, %c0_47] : memref<128x128xf32, #tpu.memory_space<vmem>>, vector<1x128xf32>
    %109 = tpu.concatenate %66, %72, %78, %84, %90, %96, %102, %108 in 0 : vector<1x128xf32>, vector<1x128xf32>, vector<1x128xf32>, vector<1x128xf32>, vector<1x128xf32>, vector<1x128xf32>, vector<1x128xf32>, vector<1x128xf32> -> vector<8x128xf32>
    %cst_48 = arith.constant dense<0.000000e+00> : vector<8x128xf32>
    %110 = tpu.matmul %56, %0, %cst_48 {dimension_numbers = #tpu.dot_dimension_numbers<[1], [0], [0], [1], [0, 0, 1, 1], [], []>} : vector<8x128xf32>, vector<128x128xf32>, vector<8x128xf32> -> vector<8x128xf32>
    %111 = arith.addf %109, %110 : vector<8x128xf32>
    %112 = vector.broadcast %1 : vector<1x128xf32> to vector<8x128xf32>
    %113 = arith.addf %111, %112 : vector<8x128xf32>
    %114 = math.tanh %113 : vector<8x128xf32>
    %115 = arith.index_cast %c1_i32_23 : i32 to index
    %c0_49 = arith.constant 0 : index
    %c0_50 = arith.constant 0 : index
    %116 = vector.load %arg6[%115, %c0_49, %c0_50] : memref<8x8x128xf32, #tpu.memory_space<vmem>>, vector<1x8x128xf32>
    %117 = vector.shape_cast %116 : vector<1x8x128xf32> to vector<8x128xf32>
    %118 = vector.shape_cast %114 : vector<8x128xf32> to vector<1x8x128xf32>
    tpu.vector_store %arg6[%115, %c0_49, %c0_50], %118 {strides = array<i32>} : memref<8x8x128xf32, #tpu.memory_space<vmem>>, vector<1x8x128xf32>,
    %c2_i32_51 = arith.constant 2 : i32
    %c8_i32_52 = arith.constant 8 : i32
    %119 = arith.muli %c2_i32_51, %c8_i32_52 : i32
    %c0_i32_53 = arith.constant 0 : i32
    %120 = arith.addi %119, %c0_i32_53 : i32
    %121 = arith.index_cast %120 : i32 to index
    %122 = memref.load %arg1[%121] : memref<64xi32, #tpu.memory_space<smem>>
    %123 = arith.index_cast %122 : i32 to index
    %c0_54 = arith.constant 0 : index
    %124 = vector.load %arg2[%123, %c0_54] : memref<128x128xf32, #tpu.memory_space<vmem>>, vector<1x128xf32>
    %c8_i32_55 = arith.constant 8 : i32
    %125 = arith.muli %c2_i32_51, %c8_i32_55 : i32
    %c1_i32_56 = arith.constant 1 : i32
    %126 = arith.addi %125, %c1_i32_56 : i32
    %127 = arith.index_cast %126 : i32 to index
    %128 = memref.load %arg1[%127] : memref<64xi32, #tpu.memory_space<smem>>
    %129 = arith.index_cast %128 : i32 to index
    %c0_57 = arith.constant 0 : index
    %130 = vector.load %arg2[%129, %c0_57] : memref<128x128xf32, #tpu.memory_space<vmem>>, vector<1x128xf32>
    %c8_i32_58 = arith.constant 8 : i32
    %131 = arith.muli %c2_i32_51, %c8_i32_58 : i32
    %c2_i32_59 = arith.constant 2 : i32
    %132 = arith.addi %131, %c2_i32_59 : i32
    %133 = arith.index_cast %132 : i32 to index
    %134 = memref.load %arg1[%133] : memref<64xi32, #tpu.memory_space<smem>>
    %135 = arith.index_cast %134 : i32 to index
    %c0_60 = arith.constant 0 : index
    %136 = vector.load %arg2[%135, %c0_60] : memref<128x128xf32, #tpu.memory_space<vmem>>, vector<1x128xf32>
    %c8_i32_61 = arith.constant 8 : i32
    %137 = arith.muli %c2_i32_51, %c8_i32_61 : i32
    %c3_i32_62 = arith.constant 3 : i32
    %138 = arith.addi %137, %c3_i32_62 : i32
    %139 = arith.index_cast %138 : i32 to index
    %140 = memref.load %arg1[%139] : memref<64xi32, #tpu.memory_space<smem>>
    %141 = arith.index_cast %140 : i32 to index
    %c0_63 = arith.constant 0 : index
    %142 = vector.load %arg2[%141, %c0_63] : memref<128x128xf32, #tpu.memory_space<vmem>>, vector<1x128xf32>
    %c8_i32_64 = arith.constant 8 : i32
    %143 = arith.muli %c2_i32_51, %c8_i32_64 : i32
    %c4_i32_65 = arith.constant 4 : i32
    %144 = arith.addi %143, %c4_i32_65 : i32
    %145 = arith.index_cast %144 : i32 to index
    %146 = memref.load %arg1[%145] : memref<64xi32, #tpu.memory_space<smem>>
    %147 = arith.index_cast %146 : i32 to index
    %c0_66 = arith.constant 0 : index
    %148 = vector.load %arg2[%147, %c0_66] : memref<128x128xf32, #tpu.memory_space<vmem>>, vector<1x128xf32>
    %c8_i32_67 = arith.constant 8 : i32
    %149 = arith.muli %c2_i32_51, %c8_i32_67 : i32
    %c5_i32_68 = arith.constant 5 : i32
    %150 = arith.addi %149, %c5_i32_68 : i32
    %151 = arith.index_cast %150 : i32 to index
    %152 = memref.load %arg1[%151] : memref<64xi32, #tpu.memory_space<smem>>
    %153 = arith.index_cast %152 : i32 to index
    %c0_69 = arith.constant 0 : index
    %154 = vector.load %arg2[%153, %c0_69] : memref<128x128xf32, #tpu.memory_space<vmem>>, vector<1x128xf32>
    %c8_i32_70 = arith.constant 8 : i32
    %155 = arith.muli %c2_i32_51, %c8_i32_70 : i32
    %c6_i32_71 = arith.constant 6 : i32
    %156 = arith.addi %155, %c6_i32_71 : i32
    %157 = arith.index_cast %156 : i32 to index
    %158 = memref.load %arg1[%157] : memref<64xi32, #tpu.memory_space<smem>>
    %159 = arith.index_cast %158 : i32 to index
    %c0_72 = arith.constant 0 : index
    %160 = vector.load %arg2[%159, %c0_72] : memref<128x128xf32, #tpu.memory_space<vmem>>, vector<1x128xf32>
    %c8_i32_73 = arith.constant 8 : i32
    %161 = arith.muli %c2_i32_51, %c8_i32_73 : i32
    %c7_i32_74 = arith.constant 7 : i32
    %162 = arith.addi %161, %c7_i32_74 : i32
    %163 = arith.index_cast %162 : i32 to index
    %164 = memref.load %arg1[%163] : memref<64xi32, #tpu.memory_space<smem>>
    %165 = arith.index_cast %164 : i32 to index
    %c0_75 = arith.constant 0 : index
    %166 = vector.load %arg2[%165, %c0_75] : memref<128x128xf32, #tpu.memory_space<vmem>>, vector<1x128xf32>
    %167 = tpu.concatenate %124, %130, %136, %142, %148, %154, %160, %166 in 0 : vector<1x128xf32>, vector<1x128xf32>, vector<1x128xf32>, vector<1x128xf32>, vector<1x128xf32>, vector<1x128xf32>, vector<1x128xf32>, vector<1x128xf32> -> vector<8x128xf32>
    %cst_76 = arith.constant dense<0.000000e+00> : vector<8x128xf32>
    %168 = tpu.matmul %114, %0, %cst_76 {dimension_numbers = #tpu.dot_dimension_numbers<[1], [0], [0], [1], [0, 0, 1, 1], [], []>} : vector<8x128xf32>, vector<128x128xf32>, vector<8x128xf32> -> vector<8x128xf32>
    %169 = arith.addf %167, %168 : vector<8x128xf32>
    %170 = vector.broadcast %1 : vector<1x128xf32> to vector<8x128xf32>
    %171 = arith.addf %169, %170 : vector<8x128xf32>
    %172 = math.tanh %171 : vector<8x128xf32>
    %173 = arith.index_cast %c2_i32_51 : i32 to index
    %c0_77 = arith.constant 0 : index
    %c0_78 = arith.constant 0 : index
    %174 = vector.load %arg6[%173, %c0_77, %c0_78] : memref<8x8x128xf32, #tpu.memory_space<vmem>>, vector<1x8x128xf32>
    %175 = vector.shape_cast %174 : vector<1x8x128xf32> to vector<8x128xf32>
    %176 = vector.shape_cast %172 : vector<8x128xf32> to vector<1x8x128xf32>
    tpu.vector_store %arg6[%173, %c0_77, %c0_78], %176 {strides = array<i32>} : memref<8x8x128xf32, #tpu.memory_space<vmem>>, vector<1x8x128xf32>,
    %c3_i32_79 = arith.constant 3 : i32
    %c8_i32_80 = arith.constant 8 : i32
    %177 = arith.muli %c3_i32_79, %c8_i32_80 : i32
    %c0_i32_81 = arith.constant 0 : i32
    %178 = arith.addi %177, %c0_i32_81 : i32
    %179 = arith.index_cast %178 : i32 to index
    %180 = memref.load %arg1[%179] : memref<64xi32, #tpu.memory_space<smem>>
    %181 = arith.index_cast %180 : i32 to index
    %c0_82 = arith.constant 0 : index
    %182 = vector.load %arg2[%181, %c0_82] : memref<128x128xf32, #tpu.memory_space<vmem>>, vector<1x128xf32>
    %c8_i32_83 = arith.constant 8 : i32
    %183 = arith.muli %c3_i32_79, %c8_i32_83 : i32
    %c1_i32_84 = arith.constant 1 : i32
    %184 = arith.addi %183, %c1_i32_84 : i32
    %185 = arith.index_cast %184 : i32 to index
    %186 = memref.load %arg1[%185] : memref<64xi32, #tpu.memory_space<smem>>
    %187 = arith.index_cast %186 : i32 to index
    %c0_85 = arith.constant 0 : index
    %188 = vector.load %arg2[%187, %c0_85] : memref<128x128xf32, #tpu.memory_space<vmem>>, vector<1x128xf32>
    %c8_i32_86 = arith.constant 8 : i32
    %189 = arith.muli %c3_i32_79, %c8_i32_86 : i32
    %c2_i32_87 = arith.constant 2 : i32
    %190 = arith.addi %189, %c2_i32_87 : i32
    %191 = arith.index_cast %190 : i32 to index
    %192 = memref.load %arg1[%191] : memref<64xi32, #tpu.memory_space<smem>>
    %193 = arith.index_cast %192 : i32 to index
    %c0_88 = arith.constant 0 : index
    %194 = vector.load %arg2[%193, %c0_88] : memref<128x128xf32, #tpu.memory_space<vmem>>, vector<1x128xf32>
    %c8_i32_89 = arith.constant 8 : i32
    %195 = arith.muli %c3_i32_79, %c8_i32_89 : i32
    %c3_i32_90 = arith.constant 3 : i32
    %196 = arith.addi %195, %c3_i32_90 : i32
    %197 = arith.index_cast %196 : i32 to index
    %198 = memref.load %arg1[%197] : memref<64xi32, #tpu.memory_space<smem>>
    %199 = arith.index_cast %198 : i32 to index
    %c0_91 = arith.constant 0 : index
    %200 = vector.load %arg2[%199, %c0_91] : memref<128x128xf32, #tpu.memory_space<vmem>>, vector<1x128xf32>
    %c8_i32_92 = arith.constant 8 : i32
    %201 = arith.muli %c3_i32_79, %c8_i32_92 : i32
    %c4_i32_93 = arith.constant 4 : i32
    %202 = arith.addi %201, %c4_i32_93 : i32
    %203 = arith.index_cast %202 : i32 to index
    %204 = memref.load %arg1[%203] : memref<64xi32, #tpu.memory_space<smem>>
    %205 = arith.index_cast %204 : i32 to index
    %c0_94 = arith.constant 0 : index
    %206 = vector.load %arg2[%205, %c0_94] : memref<128x128xf32, #tpu.memory_space<vmem>>, vector<1x128xf32>
    %c8_i32_95 = arith.constant 8 : i32
    %207 = arith.muli %c3_i32_79, %c8_i32_95 : i32
    %c5_i32_96 = arith.constant 5 : i32
    %208 = arith.addi %207, %c5_i32_96 : i32
    %209 = arith.index_cast %208 : i32 to index
    %210 = memref.load %arg1[%209] : memref<64xi32, #tpu.memory_space<smem>>
    %211 = arith.index_cast %210 : i32 to index
    %c0_97 = arith.constant 0 : index
    %212 = vector.load %arg2[%211, %c0_97] : memref<128x128xf32, #tpu.memory_space<vmem>>, vector<1x128xf32>
    %c8_i32_98 = arith.constant 8 : i32
    %213 = arith.muli %c3_i32_79, %c8_i32_98 : i32
    %c6_i32_99 = arith.constant 6 : i32
    %214 = arith.addi %213, %c6_i32_99 : i32
    %215 = arith.index_cast %214 : i32 to index
    %216 = memref.load %arg1[%215] : memref<64xi32, #tpu.memory_space<smem>>
    %217 = arith.index_cast %216 : i32 to index
    %c0_100 = arith.constant 0 : index
    %218 = vector.load %arg2[%217, %c0_100] : memref<128x128xf32, #tpu.memory_space<vmem>>, vector<1x128xf32>
    %c8_i32_101 = arith.constant 8 : i32
    %219 = arith.muli %c3_i32_79, %c8_i32_101 : i32
    %c7_i32_102 = arith.constant 7 : i32
    %220 = arith.addi %219, %c7_i32_102 : i32
    %221 = arith.index_cast %220 : i32 to index
    %222 = memref.load %arg1[%221] : memref<64xi32, #tpu.memory_space<smem>>
    %223 = arith.index_cast %222 : i32 to index
    %c0_103 = arith.constant 0 : index
    %224 = vector.load %arg2[%223, %c0_103] : memref<128x128xf32, #tpu.memory_space<vmem>>, vector<1x128xf32>
    %225 = tpu.concatenate %182, %188, %194, %200, %206, %212, %218, %224 in 0 : vector<1x128xf32>, vector<1x128xf32>, vector<1x128xf32>, vector<1x128xf32>, vector<1x128xf32>, vector<1x128xf32>, vector<1x128xf32>, vector<1x128xf32> -> vector<8x128xf32>
    %cst_104 = arith.constant dense<0.000000e+00> : vector<8x128xf32>
    %226 = tpu.matmul %172, %0, %cst_104 {dimension_numbers = #tpu.dot_dimension_numbers<[1], [0], [0], [1], [0, 0, 1, 1], [], []>} : vector<8x128xf32>, vector<128x128xf32>, vector<8x128xf32> -> vector<8x128xf32>
    %227 = arith.addf %225, %226 : vector<8x128xf32>
    %228 = vector.broadcast %1 : vector<1x128xf32> to vector<8x128xf32>
    %229 = arith.addf %227, %228 : vector<8x128xf32>
    %230 = math.tanh %229 : vector<8x128xf32>
    %231 = arith.index_cast %c3_i32_79 : i32 to index
    %c0_105 = arith.constant 0 : index
    %c0_106 = arith.constant 0 : index
    %232 = vector.load %arg6[%231, %c0_105, %c0_106] : memref<8x8x128xf32, #tpu.memory_space<vmem>>, vector<1x8x128xf32>
    %233 = vector.shape_cast %232 : vector<1x8x128xf32> to vector<8x128xf32>
    %234 = vector.shape_cast %230 : vector<8x128xf32> to vector<1x8x128xf32>
    tpu.vector_store %arg6[%231, %c0_105, %c0_106], %234 {strides = array<i32>} : memref<8x8x128xf32, #tpu.memory_space<vmem>>, vector<1x8x128xf32>,
    %c4_i32_107 = arith.constant 4 : i32
    %c8_i32_108 = arith.constant 8 : i32
    %235 = arith.muli %c4_i32_107, %c8_i32_108 : i32
    %c0_i32_109 = arith.constant 0 : i32
    %236 = arith.addi %235, %c0_i32_109 : i32
    %237 = arith.index_cast %236 : i32 to index
    %238 = memref.load %arg1[%237] : memref<64xi32, #tpu.memory_space<smem>>
    %239 = arith.index_cast %238 : i32 to index
    %c0_110 = arith.constant 0 : index
    %240 = vector.load %arg2[%239, %c0_110] : memref<128x128xf32, #tpu.memory_space<vmem>>, vector<1x128xf32>
    %c8_i32_111 = arith.constant 8 : i32
    %241 = arith.muli %c4_i32_107, %c8_i32_111 : i32
    %c1_i32_112 = arith.constant 1 : i32
    %242 = arith.addi %241, %c1_i32_112 : i32
    %243 = arith.index_cast %242 : i32 to index
    %244 = memref.load %arg1[%243] : memref<64xi32, #tpu.memory_space<smem>>
    %245 = arith.index_cast %244 : i32 to index
    %c0_113 = arith.constant 0 : index
    %246 = vector.load %arg2[%245, %c0_113] : memref<128x128xf32, #tpu.memory_space<vmem>>, vector<1x128xf32>
    %c8_i32_114 = arith.constant 8 : i32
    %247 = arith.muli %c4_i32_107, %c8_i32_114 : i32
    %c2_i32_115 = arith.constant 2 : i32
    %248 = arith.addi %247, %c2_i32_115 : i32
    %249 = arith.index_cast %248 : i32 to index
    %250 = memref.load %arg1[%249] : memref<64xi32, #tpu.memory_space<smem>>
    %251 = arith.index_cast %250 : i32 to index
    %c0_116 = arith.constant 0 : index
    %252 = vector.load %arg2[%251, %c0_116] : memref<128x128xf32, #tpu.memory_space<vmem>>, vector<1x128xf32>
    %c8_i32_117 = arith.constant 8 : i32
    %253 = arith.muli %c4_i32_107, %c8_i32_117 : i32
    %c3_i32_118 = arith.constant 3 : i32
    %254 = arith.addi %253, %c3_i32_118 : i32
    %255 = arith.index_cast %254 : i32 to index
    %256 = memref.load %arg1[%255] : memref<64xi32, #tpu.memory_space<smem>>
    %257 = arith.index_cast %256 : i32 to index
    %c0_119 = arith.constant 0 : index
    %258 = vector.load %arg2[%257, %c0_119] : memref<128x128xf32, #tpu.memory_space<vmem>>, vector<1x128xf32>
    %c8_i32_120 = arith.constant 8 : i32
    %259 = arith.muli %c4_i32_107, %c8_i32_120 : i32
    %c4_i32_121 = arith.constant 4 : i32
    %260 = arith.addi %259, %c4_i32_121 : i32
    %261 = arith.index_cast %260 : i32 to index
    %262 = memref.load %arg1[%261] : memref<64xi32, #tpu.memory_space<smem>>
    %263 = arith.index_cast %262 : i32 to index
    %c0_122 = arith.constant 0 : index
    %264 = vector.load %arg2[%263, %c0_122] : memref<128x128xf32, #tpu.memory_space<vmem>>, vector<1x128xf32>
    %c8_i32_123 = arith.constant 8 : i32
    %265 = arith.muli %c4_i32_107, %c8_i32_123 : i32
    %c5_i32_124 = arith.constant 5 : i32
    %266 = arith.addi %265, %c5_i32_124 : i32
    %267 = arith.index_cast %266 : i32 to index
    %268 = memref.load %arg1[%267] : memref<64xi32, #tpu.memory_space<smem>>
    %269 = arith.index_cast %268 : i32 to index
    %c0_125 = arith.constant 0 : index
    %270 = vector.load %arg2[%269, %c0_125] : memref<128x128xf32, #tpu.memory_space<vmem>>, vector<1x128xf32>
    %c8_i32_126 = arith.constant 8 : i32
    %271 = arith.muli %c4_i32_107, %c8_i32_126 : i32
    %c6_i32_127 = arith.constant 6 : i32
    %272 = arith.addi %271, %c6_i32_127 : i32
    %273 = arith.index_cast %272 : i32 to index
    %274 = memref.load %arg1[%273] : memref<64xi32, #tpu.memory_space<smem>>
    %275 = arith.index_cast %274 : i32 to index
    %c0_128 = arith.constant 0 : index
    %276 = vector.load %arg2[%275, %c0_128] : memref<128x128xf32, #tpu.memory_space<vmem>>, vector<1x128xf32>
    %c8_i32_129 = arith.constant 8 : i32
    %277 = arith.muli %c4_i32_107, %c8_i32_129 : i32
    %c7_i32_130 = arith.constant 7 : i32
    %278 = arith.addi %277, %c7_i32_130 : i32
    %279 = arith.index_cast %278 : i32 to index
    %280 = memref.load %arg1[%279] : memref<64xi32, #tpu.memory_space<smem>>
    %281 = arith.index_cast %280 : i32 to index
    %c0_131 = arith.constant 0 : index
    %282 = vector.load %arg2[%281, %c0_131] : memref<128x128xf32, #tpu.memory_space<vmem>>, vector<1x128xf32>
    %283 = tpu.concatenate %240, %246, %252, %258, %264, %270, %276, %282 in 0 : vector<1x128xf32>, vector<1x128xf32>, vector<1x128xf32>, vector<1x128xf32>, vector<1x128xf32>, vector<1x128xf32>, vector<1x128xf32>, vector<1x128xf32> -> vector<8x128xf32>
    %cst_132 = arith.constant dense<0.000000e+00> : vector<8x128xf32>
    %284 = tpu.matmul %230, %0, %cst_132 {dimension_numbers = #tpu.dot_dimension_numbers<[1], [0], [0], [1], [0, 0, 1, 1], [], []>} : vector<8x128xf32>, vector<128x128xf32>, vector<8x128xf32> -> vector<8x128xf32>
    %285 = arith.addf %283, %284 : vector<8x128xf32>
    %286 = vector.broadcast %1 : vector<1x128xf32> to vector<8x128xf32>
    %287 = arith.addf %285, %286 : vector<8x128xf32>
    %288 = math.tanh %287 : vector<8x128xf32>
    %289 = arith.index_cast %c4_i32_107 : i32 to index
    %c0_133 = arith.constant 0 : index
    %c0_134 = arith.constant 0 : index
    %290 = vector.load %arg6[%289, %c0_133, %c0_134] : memref<8x8x128xf32, #tpu.memory_space<vmem>>, vector<1x8x128xf32>
    %291 = vector.shape_cast %290 : vector<1x8x128xf32> to vector<8x128xf32>
    %292 = vector.shape_cast %288 : vector<8x128xf32> to vector<1x8x128xf32>
    tpu.vector_store %arg6[%289, %c0_133, %c0_134], %292 {strides = array<i32>} : memref<8x8x128xf32, #tpu.memory_space<vmem>>, vector<1x8x128xf32>,
    %c5_i32_135 = arith.constant 5 : i32
    %c8_i32_136 = arith.constant 8 : i32
    %293 = arith.muli %c5_i32_135, %c8_i32_136 : i32
    %c0_i32_137 = arith.constant 0 : i32
    %294 = arith.addi %293, %c0_i32_137 : i32
    %295 = arith.index_cast %294 : i32 to index
    %296 = memref.load %arg1[%295] : memref<64xi32, #tpu.memory_space<smem>>
    %297 = arith.index_cast %296 : i32 to index
    %c0_138 = arith.constant 0 : index
    %298 = vector.load %arg2[%297, %c0_138] : memref<128x128xf32, #tpu.memory_space<vmem>>, vector<1x128xf32>
    %c8_i32_139 = arith.constant 8 : i32
    %299 = arith.muli %c5_i32_135, %c8_i32_139 : i32
    %c1_i32_140 = arith.constant 1 : i32
    %300 = arith.addi %299, %c1_i32_140 : i32
    %301 = arith.index_cast %300 : i32 to index
    %302 = memref.load %arg1[%301] : memref<64xi32, #tpu.memory_space<smem>>
    %303 = arith.index_cast %302 : i32 to index
    %c0_141 = arith.constant 0 : index
    %304 = vector.load %arg2[%303, %c0_141] : memref<128x128xf32, #tpu.memory_space<vmem>>, vector<1x128xf32>
    %c8_i32_142 = arith.constant 8 : i32
    %305 = arith.muli %c5_i32_135, %c8_i32_142 : i32
    %c2_i32_143 = arith.constant 2 : i32
    %306 = arith.addi %305, %c2_i32_143 : i32
    %307 = arith.index_cast %306 : i32 to index
    %308 = memref.load %arg1[%307] : memref<64xi32, #tpu.memory_space<smem>>
    %309 = arith.index_cast %308 : i32 to index
    %c0_144 = arith.constant 0 : index
    %310 = vector.load %arg2[%309, %c0_144] : memref<128x128xf32, #tpu.memory_space<vmem>>, vector<1x128xf32>
    %c8_i32_145 = arith.constant 8 : i32
    %311 = arith.muli %c5_i32_135, %c8_i32_145 : i32
    %c3_i32_146 = arith.constant 3 : i32
    %312 = arith.addi %311, %c3_i32_146 : i32
    %313 = arith.index_cast %312 : i32 to index
    %314 = memref.load %arg1[%313] : memref<64xi32, #tpu.memory_space<smem>>
    %315 = arith.index_cast %314 : i32 to index
    %c0_147 = arith.constant 0 : index
    %316 = vector.load %arg2[%315, %c0_147] : memref<128x128xf32, #tpu.memory_space<vmem>>, vector<1x128xf32>
    %c8_i32_148 = arith.constant 8 : i32
    %317 = arith.muli %c5_i32_135, %c8_i32_148 : i32
    %c4_i32_149 = arith.constant 4 : i32
    %318 = arith.addi %317, %c4_i32_149 : i32
    %319 = arith.index_cast %318 : i32 to index
    %320 = memref.load %arg1[%319] : memref<64xi32, #tpu.memory_space<smem>>
    %321 = arith.index_cast %320 : i32 to index
    %c0_150 = arith.constant 0 : index
    %322 = vector.load %arg2[%321, %c0_150] : memref<128x128xf32, #tpu.memory_space<vmem>>, vector<1x128xf32>
    %c8_i32_151 = arith.constant 8 : i32
    %323 = arith.muli %c5_i32_135, %c8_i32_151 : i32
    %c5_i32_152 = arith.constant 5 : i32
    %324 = arith.addi %323, %c5_i32_152 : i32
    %325 = arith.index_cast %324 : i32 to index
    %326 = memref.load %arg1[%325] : memref<64xi32, #tpu.memory_space<smem>>
    %327 = arith.index_cast %326 : i32 to index
    %c0_153 = arith.constant 0 : index
    %328 = vector.load %arg2[%327, %c0_153] : memref<128x128xf32, #tpu.memory_space<vmem>>, vector<1x128xf32>
    %c8_i32_154 = arith.constant 8 : i32
    %329 = arith.muli %c5_i32_135, %c8_i32_154 : i32
    %c6_i32_155 = arith.constant 6 : i32
    %330 = arith.addi %329, %c6_i32_155 : i32
    %331 = arith.index_cast %330 : i32 to index
    %332 = memref.load %arg1[%331] : memref<64xi32, #tpu.memory_space<smem>>
    %333 = arith.index_cast %332 : i32 to index
    %c0_156 = arith.constant 0 : index
    %334 = vector.load %arg2[%333, %c0_156] : memref<128x128xf32, #tpu.memory_space<vmem>>, vector<1x128xf32>
    %c8_i32_157 = arith.constant 8 : i32
    %335 = arith.muli %c5_i32_135, %c8_i32_157 : i32
    %c7_i32_158 = arith.constant 7 : i32
    %336 = arith.addi %335, %c7_i32_158 : i32
    %337 = arith.index_cast %336 : i32 to index
    %338 = memref.load %arg1[%337] : memref<64xi32, #tpu.memory_space<smem>>
    %339 = arith.index_cast %338 : i32 to index
    %c0_159 = arith.constant 0 : index
    %340 = vector.load %arg2[%339, %c0_159] : memref<128x128xf32, #tpu.memory_space<vmem>>, vector<1x128xf32>
    %341 = tpu.concatenate %298, %304, %310, %316, %322, %328, %334, %340 in 0 : vector<1x128xf32>, vector<1x128xf32>, vector<1x128xf32>, vector<1x128xf32>, vector<1x128xf32>, vector<1x128xf32>, vector<1x128xf32>, vector<1x128xf32> -> vector<8x128xf32>
    %cst_160 = arith.constant dense<0.000000e+00> : vector<8x128xf32>
    %342 = tpu.matmul %288, %0, %cst_160 {dimension_numbers = #tpu.dot_dimension_numbers<[1], [0], [0], [1], [0, 0, 1, 1], [], []>} : vector<8x128xf32>, vector<128x128xf32>, vector<8x128xf32> -> vector<8x128xf32>
    %343 = arith.addf %341, %342 : vector<8x128xf32>
    %344 = vector.broadcast %1 : vector<1x128xf32> to vector<8x128xf32>
    %345 = arith.addf %343, %344 : vector<8x128xf32>
    %346 = math.tanh %345 : vector<8x128xf32>
    %347 = arith.index_cast %c5_i32_135 : i32 to index
    %c0_161 = arith.constant 0 : index
    %c0_162 = arith.constant 0 : index
    %348 = vector.load %arg6[%347, %c0_161, %c0_162] : memref<8x8x128xf32, #tpu.memory_space<vmem>>, vector<1x8x128xf32>
    %349 = vector.shape_cast %348 : vector<1x8x128xf32> to vector<8x128xf32>
    %350 = vector.shape_cast %346 : vector<8x128xf32> to vector<1x8x128xf32>
    tpu.vector_store %arg6[%347, %c0_161, %c0_162], %350 {strides = array<i32>} : memref<8x8x128xf32, #tpu.memory_space<vmem>>, vector<1x8x128xf32>,
    %c6_i32_163 = arith.constant 6 : i32
    %c8_i32_164 = arith.constant 8 : i32
    %351 = arith.muli %c6_i32_163, %c8_i32_164 : i32
    %c0_i32_165 = arith.constant 0 : i32
    %352 = arith.addi %351, %c0_i32_165 : i32
    %353 = arith.index_cast %352 : i32 to index
    %354 = memref.load %arg1[%353] : memref<64xi32, #tpu.memory_space<smem>>
    %355 = arith.index_cast %354 : i32 to index
    %c0_166 = arith.constant 0 : index
    %356 = vector.load %arg2[%355, %c0_166] : memref<128x128xf32, #tpu.memory_space<vmem>>, vector<1x128xf32>
    %c8_i32_167 = arith.constant 8 : i32
    %357 = arith.muli %c6_i32_163, %c8_i32_167 : i32
    %c1_i32_168 = arith.constant 1 : i32
    %358 = arith.addi %357, %c1_i32_168 : i32
    %359 = arith.index_cast %358 : i32 to index
    %360 = memref.load %arg1[%359] : memref<64xi32, #tpu.memory_space<smem>>
    %361 = arith.index_cast %360 : i32 to index
    %c0_169 = arith.constant 0 : index
    %362 = vector.load %arg2[%361, %c0_169] : memref<128x128xf32, #tpu.memory_space<vmem>>, vector<1x128xf32>
    %c8_i32_170 = arith.constant 8 : i32
    %363 = arith.muli %c6_i32_163, %c8_i32_170 : i32
    %c2_i32_171 = arith.constant 2 : i32
    %364 = arith.addi %363, %c2_i32_171 : i32
    %365 = arith.index_cast %364 : i32 to index
    %366 = memref.load %arg1[%365] : memref<64xi32, #tpu.memory_space<smem>>
    %367 = arith.index_cast %366 : i32 to index
    %c0_172 = arith.constant 0 : index
    %368 = vector.load %arg2[%367, %c0_172] : memref<128x128xf32, #tpu.memory_space<vmem>>, vector<1x128xf32>
    %c8_i32_173 = arith.constant 8 : i32
    %369 = arith.muli %c6_i32_163, %c8_i32_173 : i32
    %c3_i32_174 = arith.constant 3 : i32
    %370 = arith.addi %369, %c3_i32_174 : i32
    %371 = arith.index_cast %370 : i32 to index
    %372 = memref.load %arg1[%371] : memref<64xi32, #tpu.memory_space<smem>>
    %373 = arith.index_cast %372 : i32 to index
    %c0_175 = arith.constant 0 : index
    %374 = vector.load %arg2[%373, %c0_175] : memref<128x128xf32, #tpu.memory_space<vmem>>, vector<1x128xf32>
    %c8_i32_176 = arith.constant 8 : i32
    %375 = arith.muli %c6_i32_163, %c8_i32_176 : i32
    %c4_i32_177 = arith.constant 4 : i32
    %376 = arith.addi %375, %c4_i32_177 : i32
    %377 = arith.index_cast %376 : i32 to index
    %378 = memref.load %arg1[%377] : memref<64xi32, #tpu.memory_space<smem>>
    %379 = arith.index_cast %378 : i32 to index
    %c0_178 = arith.constant 0 : index
    %380 = vector.load %arg2[%379, %c0_178] : memref<128x128xf32, #tpu.memory_space<vmem>>, vector<1x128xf32>
    %c8_i32_179 = arith.constant 8 : i32
    %381 = arith.muli %c6_i32_163, %c8_i32_179 : i32
    %c5_i32_180 = arith.constant 5 : i32
    %382 = arith.addi %381, %c5_i32_180 : i32
    %383 = arith.index_cast %382 : i32 to index
    %384 = memref.load %arg1[%383] : memref<64xi32, #tpu.memory_space<smem>>
    %385 = arith.index_cast %384 : i32 to index
    %c0_181 = arith.constant 0 : index
    %386 = vector.load %arg2[%385, %c0_181] : memref<128x128xf32, #tpu.memory_space<vmem>>, vector<1x128xf32>
    %c8_i32_182 = arith.constant 8 : i32
    %387 = arith.muli %c6_i32_163, %c8_i32_182 : i32
    %c6_i32_183 = arith.constant 6 : i32
    %388 = arith.addi %387, %c6_i32_183 : i32
    %389 = arith.index_cast %388 : i32 to index
    %390 = memref.load %arg1[%389] : memref<64xi32, #tpu.memory_space<smem>>
    %391 = arith.index_cast %390 : i32 to index
    %c0_184 = arith.constant 0 : index
    %392 = vector.load %arg2[%391, %c0_184] : memref<128x128xf32, #tpu.memory_space<vmem>>, vector<1x128xf32>
    %c8_i32_185 = arith.constant 8 : i32
    %393 = arith.muli %c6_i32_163, %c8_i32_185 : i32
    %c7_i32_186 = arith.constant 7 : i32
    %394 = arith.addi %393, %c7_i32_186 : i32
    %395 = arith.index_cast %394 : i32 to index
    %396 = memref.load %arg1[%395] : memref<64xi32, #tpu.memory_space<smem>>
    %397 = arith.index_cast %396 : i32 to index
    %c0_187 = arith.constant 0 : index
    %398 = vector.load %arg2[%397, %c0_187] : memref<128x128xf32, #tpu.memory_space<vmem>>, vector<1x128xf32>
    %399 = tpu.concatenate %356, %362, %368, %374, %380, %386, %392, %398 in 0 : vector<1x128xf32>, vector<1x128xf32>, vector<1x128xf32>, vector<1x128xf32>, vector<1x128xf32>, vector<1x128xf32>, vector<1x128xf32>, vector<1x128xf32> -> vector<8x128xf32>
    %cst_188 = arith.constant dense<0.000000e+00> : vector<8x128xf32>
    %400 = tpu.matmul %346, %0, %cst_188 {dimension_numbers = #tpu.dot_dimension_numbers<[1], [0], [0], [1], [0, 0, 1, 1], [], []>} : vector<8x128xf32>, vector<128x128xf32>, vector<8x128xf32> -> vector<8x128xf32>
    %401 = arith.addf %399, %400 : vector<8x128xf32>
    %402 = vector.broadcast %1 : vector<1x128xf32> to vector<8x128xf32>
    %403 = arith.addf %401, %402 : vector<8x128xf32>
    %404 = math.tanh %403 : vector<8x128xf32>
    %405 = arith.index_cast %c6_i32_163 : i32 to index
    %c0_189 = arith.constant 0 : index
    %c0_190 = arith.constant 0 : index
    %406 = vector.load %arg6[%405, %c0_189, %c0_190] : memref<8x8x128xf32, #tpu.memory_space<vmem>>, vector<1x8x128xf32>
    %407 = vector.shape_cast %406 : vector<1x8x128xf32> to vector<8x128xf32>
    %408 = vector.shape_cast %404 : vector<8x128xf32> to vector<1x8x128xf32>
    tpu.vector_store %arg6[%405, %c0_189, %c0_190], %408 {strides = array<i32>} : memref<8x8x128xf32, #tpu.memory_space<vmem>>, vector<1x8x128xf32>,
    %c7_i32_191 = arith.constant 7 : i32
    %c8_i32_192 = arith.constant 8 : i32
    %409 = arith.muli %c7_i32_191, %c8_i32_192 : i32
    %c0_i32_193 = arith.constant 0 : i32
    %410 = arith.addi %409, %c0_i32_193 : i32
    %411 = arith.index_cast %410 : i32 to index
    %412 = memref.load %arg1[%411] : memref<64xi32, #tpu.memory_space<smem>>
    %413 = arith.index_cast %412 : i32 to index
    %c0_194 = arith.constant 0 : index
    %414 = vector.load %arg2[%413, %c0_194] : memref<128x128xf32, #tpu.memory_space<vmem>>, vector<1x128xf32>
    %c8_i32_195 = arith.constant 8 : i32
    %415 = arith.muli %c7_i32_191, %c8_i32_195 : i32
    %c1_i32_196 = arith.constant 1 : i32
    %416 = arith.addi %415, %c1_i32_196 : i32
    %417 = arith.index_cast %416 : i32 to index
    %418 = memref.load %arg1[%417] : memref<64xi32, #tpu.memory_space<smem>>
    %419 = arith.index_cast %418 : i32 to index
    %c0_197 = arith.constant 0 : index
    %420 = vector.load %arg2[%419, %c0_197] : memref<128x128xf32, #tpu.memory_space<vmem>>, vector<1x128xf32>
    %c8_i32_198 = arith.constant 8 : i32
    %421 = arith.muli %c7_i32_191, %c8_i32_198 : i32
    %c2_i32_199 = arith.constant 2 : i32
    %422 = arith.addi %421, %c2_i32_199 : i32
    %423 = arith.index_cast %422 : i32 to index
    %424 = memref.load %arg1[%423] : memref<64xi32, #tpu.memory_space<smem>>
    %425 = arith.index_cast %424 : i32 to index
    %c0_200 = arith.constant 0 : index
    %426 = vector.load %arg2[%425, %c0_200] : memref<128x128xf32, #tpu.memory_space<vmem>>, vector<1x128xf32>
    %c8_i32_201 = arith.constant 8 : i32
    %427 = arith.muli %c7_i32_191, %c8_i32_201 : i32
    %c3_i32_202 = arith.constant 3 : i32
    %428 = arith.addi %427, %c3_i32_202 : i32
    %429 = arith.index_cast %428 : i32 to index
    %430 = memref.load %arg1[%429] : memref<64xi32, #tpu.memory_space<smem>>
    %431 = arith.index_cast %430 : i32 to index
    %c0_203 = arith.constant 0 : index
    %432 = vector.load %arg2[%431, %c0_203] : memref<128x128xf32, #tpu.memory_space<vmem>>, vector<1x128xf32>
    %c8_i32_204 = arith.constant 8 : i32
    %433 = arith.muli %c7_i32_191, %c8_i32_204 : i32
    %c4_i32_205 = arith.constant 4 : i32
    %434 = arith.addi %433, %c4_i32_205 : i32
    %435 = arith.index_cast %434 : i32 to index
    %436 = memref.load %arg1[%435] : memref<64xi32, #tpu.memory_space<smem>>
    %437 = arith.index_cast %436 : i32 to index
    %c0_206 = arith.constant 0 : index
    %438 = vector.load %arg2[%437, %c0_206] : memref<128x128xf32, #tpu.memory_space<vmem>>, vector<1x128xf32>
    %c8_i32_207 = arith.constant 8 : i32
    %439 = arith.muli %c7_i32_191, %c8_i32_207 : i32
    %c5_i32_208 = arith.constant 5 : i32
    %440 = arith.addi %439, %c5_i32_208 : i32
    %441 = arith.index_cast %440 : i32 to index
    %442 = memref.load %arg1[%441] : memref<64xi32, #tpu.memory_space<smem>>
    %443 = arith.index_cast %442 : i32 to index
    %c0_209 = arith.constant 0 : index
    %444 = vector.load %arg2[%443, %c0_209] : memref<128x128xf32, #tpu.memory_space<vmem>>, vector<1x128xf32>
    %c8_i32_210 = arith.constant 8 : i32
    %445 = arith.muli %c7_i32_191, %c8_i32_210 : i32
    %c6_i32_211 = arith.constant 6 : i32
    %446 = arith.addi %445, %c6_i32_211 : i32
    %447 = arith.index_cast %446 : i32 to index
    %448 = memref.load %arg1[%447] : memref<64xi32, #tpu.memory_space<smem>>
    %449 = arith.index_cast %448 : i32 to index
    %c0_212 = arith.constant 0 : index
    %450 = vector.load %arg2[%449, %c0_212] : memref<128x128xf32, #tpu.memory_space<vmem>>, vector<1x128xf32>
    %c8_i32_213 = arith.constant 8 : i32
    %451 = arith.muli %c7_i32_191, %c8_i32_213 : i32
    %c7_i32_214 = arith.constant 7 : i32
    %452 = arith.addi %451, %c7_i32_214 : i32
    %453 = arith.index_cast %452 : i32 to index
    %454 = memref.load %arg1[%453] : memref<64xi32, #tpu.memory_space<smem>>
    %455 = arith.index_cast %454 : i32 to index
    %c0_215 = arith.constant 0 : index
    %456 = vector.load %arg2[%455, %c0_215] : memref<128x128xf32, #tpu.memory_space<vmem>>, vector<1x128xf32>
    %457 = tpu.concatenate %414, %420, %426, %432, %438, %444, %450, %456 in 0 : vector<1x128xf32>, vector<1x128xf32>, vector<1x128xf32>, vector<1x128xf32>, vector<1x128xf32>, vector<1x128xf32>, vector<1x128xf32>, vector<1x128xf32> -> vector<8x128xf32>
    %cst_216 = arith.constant dense<0.000000e+00> : vector<8x128xf32>
    %458 = tpu.matmul %404, %0, %cst_216 {dimension_numbers = #tpu.dot_dimension_numbers<[1], [0], [0], [1], [0, 0, 1, 1], [], []>} : vector<8x128xf32>, vector<128x128xf32>, vector<8x128xf32> -> vector<8x128xf32>
    %459 = arith.addf %457, %458 : vector<8x128xf32>
    %460 = vector.broadcast %1 : vector<1x128xf32> to vector<8x128xf32>
    %461 = arith.addf %459, %460 : vector<8x128xf32>
    %462 = math.tanh %461 : vector<8x128xf32>
    %463 = arith.index_cast %c7_i32_191 : i32 to index
    %c0_217 = arith.constant 0 : index
    %c0_218 = arith.constant 0 : index
    %464 = vector.load %arg6[%463, %c0_217, %c0_218] : memref<8x8x128xf32, #tpu.memory_space<vmem>>, vector<1x8x128xf32>
    %465 = vector.shape_cast %464 : vector<1x8x128xf32> to vector<8x128xf32>
    %466 = vector.shape_cast %462 : vector<8x128xf32> to vector<1x8x128xf32>
    tpu.vector_store %arg6[%463, %c0_217, %c0_218], %466 {strides = array<i32>} : memref<8x8x128xf32, #tpu.memory_space<vmem>>, vector<1x8x128xf32>,
    %c8_i32_219 = arith.constant 8 : i32
    return
  }
  func.func @transform_0(%arg0: i32, %arg1: memref<64xi32, #tpu.memory_space<smem>>) -> (i32, i32) {
    %c0_i32 = arith.constant 0 : i32
    %c0_i32_0 = arith.constant 0 : i32
    %c0_i32_1 = arith.constant 0 : i32
    return %c0_i32, %c0_i32_0 : i32, i32
  }
  func.func @transform_1(%arg0: i32, %arg1: memref<64xi32, #tpu.memory_space<smem>>) -> (i32, i32) {
    %c0_i32 = arith.constant 0 : i32
    %c0_i32_0 = arith.constant 0 : i32
    %c0_i32_1 = arith.constant 0 : i32
    return %c0_i32, %c0_i32_0 : i32, i32
  }
  func.func @transform_2(%arg0: i32, %arg1: memref<64xi32, #tpu.memory_space<smem>>) -> (i32, i32) {
    %c0_i32 = arith.constant 0 : i32
    %c0_i32_0 = arith.constant 0 : i32
    %c0_i32_1 = arith.constant 0 : i32
    return %c0_i32, %c0_i32_0 : i32, i32
  }
  func.func @transform_3(%arg0: i32, %arg1: memref<64xi32, #tpu.memory_space<smem>>) -> (i32, i32) {
    %c0_i32 = arith.constant 0 : i32
    %c0_i32_0 = arith.constant 0 : i32
    %c0_i32_1 = arith.constant 0 : i32
    return %c0_i32, %c0_i32_0 : i32, i32
  }
  func.func @transform_4(%arg0: i32, %arg1: memref<64xi32, #tpu.memory_space<smem>>) -> (i32, i32, i32) {
    %c0_i32 = arith.constant 0 : i32
    %c0_i32_0 = arith.constant 0 : i32
    %c0_i32_1 = arith.constant 0 : i32
    %c0_i32_2 = arith.constant 0 : i32
    return %c0_i32, %c0_i32_0, %c0_i32_1 : i32, i32, i32
  }
}

</mosaic_0001>

<bundles_post_ra>
// kernel: tpu_custom_call.1
= control target key start
LH: loop header
LB: loop body
LE: loop exit
PB: predicated region body
PF: predicated region fallthrough
CT: control target
= control target key end

     0   :  { %s2288_s0 = inlined_call_operand.hbm [shape: s32[64], index: 0, kind: input, shape index: {}]   ;;  %s2289_s1 = inlined_call_operand.hbm [shape: f32[128,128], index: 1, kind: input, shape index: {}]   ;;  %s2290_s2 = inlined_call_operand.hbm [shape: f32[128,128], index: 2, kind: input, shape index: {}]   ;;  %s2291_s3 = inlined_call_operand.vmem [shape: f32[1,128], index: 3, kind: input, shape index: {}]   ;;  %s2292_s4 = inlined_call_operand.vmem [shape: f32[8,128], index: 4, kind: input, shape index: {}]   ;;  %s2293_s5 = inlined_call_operand.hbm [shape: f32[8,8,128], index: 5, kind: output, shape index: {}]  }
   0x1   :  { %s1876_s20 = scalar_lea.hbm %s2288_s0, 16 }
   0x2   :  { %p1877_p0 = scmp.ne.s32.totalorder %s2288_s0, %s1876_s20  ;;  %p1880_p1 = scmp.lt.u32.totalorder %s1876_s20, %s2288_s0 }
   0x4   :  { %p1882_p2 = pnand %p1880_p1, %p1877_p0 }
   0x6   :  { %1885 = shalt.err (!%p1882_p2)  }
   0x7   :  { %s1960_s25 = smov [#allocation3]  }
   0x8   :  { %11 = dma.hbm_to_smem %s2288_s0, 16, %s1960_s25, [#allocation2] }
   0x9   :  { %1952 = dma.done.wait [#allocation2], 16 }
   0xa   :  { %1953 = vsyncadd [#allocation2], 4294967280 }
   0xb   :  { %13 = sfence }
   0xc   :  { %14 = vsyncpa [#allocation5], 0 }
   0xd   :  { %15 = vsyncpa [#allocation8], 0 }
   0xe   :  { %16 = vsyncpa [#allocation6], 0  ;;  %s1961_s28 = smov [#allocation4]   ;;  %s1886_s7 = scalar_lea.hbm %s2289_s1, 2048 }
   0xf   :  { %s22_s29 = sshll.u32 %s1961_s28, 4  ;;  %p1887_p3 = scmp.ne.s32.totalorder %s2289_s1, %s1886_s7  ;;  %s23_s29 = int_to_ptr.vmem [resolvable:$true] %s22_s29 }
  0x10   :  { %p1890_p4 = scmp.lt.u32.totalorder %s1886_s7, %s2289_s1 }
  0x12   :  { %p1892_p5 = pnand %p1890_p4, %p1887_p3 }
  0x14   :  { %1895 = shalt.err (!%p1892_p5)
}
  0x15   :  { %s1896_s0 = scalar_lea.vmem %s23_s29, 2048  ;;  %p1901_p7 = scmp.lt.s32.totalorder %s23_s29, %s23_s29 }
  0x16   :  { %p1897_p6 = scmp.ne.s32.totalorder %s23_s29, %s1896_s0  ;;  %p1902_p8 = scmp.lt.s32.totalorder %s1896_s0, %s1896_s0 }
  0x18   :  { %p1903_p9 = por %p1902_p8, %p1901_p7 }
  0x1a   :  { %p1904_p10 = pnand %p1903_p9, %p1897_p6 }
  0x1c   :  { %1907 = shalt.err (!%p1904_p10)
}
  0x1d   :  { %s1962_s12 = smov 128   ;;  %s1963_s13 = smov 8  }
  0x1e   :  { %28 = dma.hbm_to_vmem [thread:$0]  %s2289_s1, 2048, %s23_s29, [#allocation5], %s1962_s12, %s1962_s12, %s1963_s13  }
  0x1f   :  { %s1964_s16 = smov [#allocation7]   ;;  %s1908_s20 = scalar_lea.hbm %s2290_s2, 2048 }
  0x20   :  { %s34_s17 = sshll.u32 %s1964_s16, 4  ;;  %p1909_p11 = scmp.ne.s32.totalorder %s2290_s2, %s1908_s20  ;;  %s35_s17 = int_to_ptr.vmem [resolvable:$true] %s34_s17 }
  0x21   :  { %p1912_p12 = scmp.lt.u32.totalorder %s1908_s20, %s2290_s2 }
  0x23   :  { %p1914_p13 = pnand %p1912_p12, %p1909_p11 }
  0x25   :  { %1917 = shalt.err (!%p1914_p13)
}
  0x26   :  { %s1918_s25 = scalar_lea.vmem %s35_s17, 2048  ;;  %p1923_p1 = scmp.lt.s32.totalorder %s35_s17, %s35_s17 }
  0x27   :  { %p1919_p0 = scmp.ne.s32.totalorder %s35_s17, %s1918_s25  ;;  %p1924_p2 = scmp.lt.s32.totalorder %s1918_s25, %s1918_s25 }
  0x29   :  { %p1925_p3 = por %p1924_p2, %p1923_p1 }
  0x2b   :  { %p1926_p4 = pnand %p1925_p3, %p1919_p0 }
  0x2d   :  { %1929 = shalt.err (!%p1926_p4)
}
  0x2e   :  { %40 = dma.hbm_to_vmem [thread:$0]  %s2290_s2, 2048, %s35_s17, [#allocation8], %s1962_s12, %s1962_s12, %s1963_s13  }
  0x2f   :  { %1954 = dma.done.wait [#allocation5], 2048  }
  0x30   :  { %1955 = vsyncadd [#allocation5], 4294965248 }
  0x31   :  { %1956 = dma.done.wait [#allocation8], 2048  }
  0x32   :  { %1957 = vsyncadd [#allocation8], 4294965248  ;;  %v1965_v0 = vmov 0.0|0.0   ;;  %vm1966_vm0 = vmmov 0   ;;  %v1967_v1 = vmov 0.0   ;;  %v51_v2 = vld [vmem:[#allocation7] sm:$0xff] }
  0x33   :  { %1659 = vmatprep.subr.bf16.mxu0 %v1965_v0  ;;  %1411 = vmatprep.mubr.msk.f32.mxu0 %vm1966_vm0, %v1967_v1  ;;  %v52_v3 = vld [vmem:[#allocation7 + $0x8] sm:$0xff]  ;;  %v53_v4 = vld [vmem:[#allocation7 + $0x10] sm:$0xff]  ;;  %v54_v6 = vld [vmem:[#allocation7 + $0x18] sm:$0xff]  ;;  %s1180_s28 = sld [smem:[#allocation3 + $0x2]]  ;;  %s69_s29 = sld [smem:[#allocation3]]  ;;  %vm114_vm1 = vcmask 1040384  }
  0x34   :  { %1683 = vmatprep.subr.bf16.mxu1 %v1965_v0  ;;  %1446 = vmatprep.mubr.msk.f32.mxu1 %vm1966_vm0, %v1967_v1  ;;  %v2047_v5 = vpack.c.bf16 %v52_v3, %v51_v2  ;;  %v2050_v7 = vpack.c.bf16 %v54_v6, %v53_v4  ;;  %v55_v8 = vld [vmem:[#allocation7 + $0x20] sm:$0xff]  ;;  %v56_v9 = vld [vmem:[#allocation7 + $0x28] sm:$0xff]  ;;  %v57_v11 = vld [vmem:[#allocation7 + $0x30] sm:$0xff]  ;;  %s1181_s30 = sld [smem:[#allocation3 + $0x3]]  ;;  %s1182_s6 = sld [smem:[#allocation3 + $0x4]]  ;;  %vm116_vm2 = vcmask 1041408  }
  0x35   :  { %v2056_v10 = vpack.c.bf16 %v56_v9, %v55_v8  ;;  %v58_v12 = vld [vmem:[#allocation7 + $0x38] sm:$0xff]  ;;  %v59_v14 = vld [vmem:[#allocation7 + $0x40] sm:$0xff]  ;;  %v60_v15 = vld [vmem:[#allocation7 + $0x48] sm:$0xff]  ;;  %s1183_s8 = sld [smem:[#allocation3 + $0x5]]  ;;  %s1184_s11 = sld [smem:[#allocation3 + $0x6]]  ;;  %vm118_vm3 = vcmask 1042432  }
  0x36   :  { %1661 = vmatpush3.bf16.msra.mxu0 %v2047_v5  ;;  %1685 = vmatpush3.bf16.msra.mxu1 %v2047_v5  ;;  %v2062_v13 = vpack.c.bf16 %v58_v12, %v57_v11  ;;  %v2068_v16 = vpack.c.bf16 %v60_v15, %v59_v14  ;;  %v61_v17 = vld [vmem:[#allocation7 + $0x50] sm:$0xff]  ;;  %v62_v18 = vld [vmem:[#allocation7 + $0x58] sm:$0xff]  ;;  %v63_v20 = vld [vmem:[#allocation7 + $0x60] sm:$0xff]  ;;  %s1185_s14 = sld [smem:[#allocation3 + $0x7]]  ;;  %vm120_vm4 = vcmask 1043456   ;;  %vm122_vm5 = vcmask 1044480  }
  0x37   :  { %1662 = vmatprep.subr.bf16.mxu0 %v1965_v0  ;;  %1686 = vmatprep.subr.bf16.mxu1 %v1965_v0  ;;  %v2074_v19 = vpack.c.bf16 %v62_v18, %v61_v17  ;;  %v64_v21 = vld [vmem:[#allocation7 + $0x68] sm:$0xff]  ;;  %v65_v23 = vld [vmem:[#allocation7 + $0x70] sm:$0xff]  ;;  %v66_v24 = vld [vmem:[#allocation7 + $0x78] sm:$0xff]  ;;  %vm124_vm6 = vcmask 1045504   ;;  %vm126_vm7 = vcmask 1046528   ;;  %s1189_s21 = sld [smem:[#allocation3 + $0xa]] }
  0x38   :  { %v2080_v22 = vpack.c.bf16 %v64_v21, %v63_v20  ;;  %v2086_v25 = vpack.c.bf16 %v66_v24, %v65_v23  ;;  %v68_v26 = vld [vmem:[%s2292_s4] sm:$0xff]  ;;  %s1179_s4 = sld [smem:[#allocation3 + $0x1]]  ;;  %s1187_s22 = sld [smem:[#allocation3 + $0x8]] }
  0x39   :  { %s76_s9 = scalar_lea.vmem [#allocation4], %s1180_s28  ;;  %s70_s10 = scalar_lea.vmem [#allocation4], %s69_s29  ;;  %v2126_v49 = vld [vmem:[%s2291_s3] ss:$0 sm:$0xff] }
  0x3a   :  { %1664 = vmatpush3.bf16.msra.mxu0 %v2050_v7  ;;  %1688 = vmatpush3.bf16.msra.mxu1 %v2050_v7  ;;  %v77_v28 = vld [vmem:[%s76_s9] sm:$0x1]  ;;  %s79_s0 = scalar_lea.vmem [#allocation4], %s1181_s30  ;;  %s82_s15 = scalar_lea.vmem [#allocation4], %s1182_s6 }
  0x3b   :  { %1665 = vmatprep.subr.bf16.mxu0 %v1965_v0  ;;  %1689 = vmatprep.subr.bf16.mxu1 %v1965_v0  ;;  %v71_v30 = vld [vmem:[%s70_s10] sm:$0x1]  ;;  %v97_v32 = vrot.slane %v77_v28, 6  ;;  %s85_s16 = scalar_lea.vmem [#allocation4], %s1183_s8  ;;  %s88_s17 = scalar_lea.vmem [#allocation4], %s1184_s11 }
  0x3c   :  { %v80_v31 = vld [vmem:[%s79_s0] sm:$0x1]  ;;  %s91_s18 = scalar_lea.vmem [#allocation4], %s1185_s14  ;;  %s1188_s3 = sld [smem:[#allocation3 + $0x9]] }
  0x3d   :  { %v83_v34 = vld [vmem:[%s82_s15] sm:$0x1]  ;;  %v100_v35 = vrot.slane %v80_v31, 5  ;;  %s1190_s23 = sld [smem:[#allocation3 + $0xb]]  ;;  %s1191_s24 = sld [smem:[#allocation3 + $0xc]] }
  0x3e   :  { %1667 = vmatpush3.bf16.msra.mxu0 %v2056_v10  ;;  %1691 = vmatpush3.bf16.msra.mxu1 %v2056_v10  ;;  %s73_s7 = scalar_lea.vmem [#allocation4], %s1179_s4  ;;  %v86_v37 = vld [vmem:[%s85_s16] sm:$0x1]  ;;  %v103_v38 = vrot.slane %v83_v34, 4  ;;  %s1192_s1 = sld [smem:[#allocation3 + $0xd]] }
  0x3f   :  { %1668 = vmatprep.subr.bf16.mxu0 %v1965_v0  ;;  %1692 = vmatprep.subr.bf16.mxu1 %v1965_v0  ;;  %v74_v27 = vld [vmem:[%s73_s7] sm:$0x1]  ;;  %v106_v41 = vrot.slane %v86_v37, 3  ;;  %s215_s26 = scalar_lea.vmem [#allocation4], %s1189_s21  ;;  %s209_s2 = scalar_lea.vmem [#allocation4], %s1187_s22 }
  0x40   :  { %v94_v29 = vrot.slane %v74_v27, 7  ;;  %v89_v40 = vld [vmem:[%s88_s17] sm:$0x1]  ;;  %s1193_s27 = sld [smem:[#allocation3 + $0xe]]  ;;  %s1194_s28 = sld [smem:[#allocation3 + $0xf]] }
  0x41   :  { %v92_v43 = vld [vmem:[%s91_s18] sm:$0x1]  ;;  %v109_v44 = vrot.slane %v89_v40, 2  ;;  %s1196_s8 = sld [smem:[#allocation3 + $0x11]]  ;;  %s1197_s9 = sld [smem:[#allocation3 + $0x12]] }
  0x42   :  { %1670 = vmatpush3.bf16.msra.mxu0 %v2062_v13  ;;  %1694 = vmatpush3.bf16.msra.mxu1 %v2062_v13  ;;  %v115_v33 = vsel %vm114_vm1, %v71_v30, %v94_v29  ;;  %v112_v46 = vrot.slane %v92_v43, 1  ;;  %s212_s25 = scalar_lea.vmem [#allocation4], %s1188_s3  ;;  %v216_v56 = vld [vmem:[%s215_s26] sm:$0x1]  ;;  %s1195_s10 = sld [smem:[#allocation3 + $0x10]] }
  0x43   :  { %1671 = vmatprep.subr.bf16.mxu0 %v1965_v0  ;;  %1695 = vmatprep.subr.bf16.mxu1 %v1965_v0  ;;  %v117_v36 = vsel %vm116_vm2, %v115_v33, %v97_v32  ;;  %v213_v55 = vld [vmem:[%s212_s25] sm:$0x1]  ;;  %s218_s4 = scalar_lea.vmem [#allocation4], %s1190_s23  ;;  %v236_v60 = vrot.slane %v216_v56, 6  ;;  %s221_s29 = scalar_lea.vmem [#allocation4], %s1191_s24 }
  0x44   :  { %v119_v39 = vsel %vm118_vm3, %v117_v36, %v100_v35  ;;  %v233_v57 = vrot.slane %v213_v55, 7  ;;  %v210_v58 = vld [vmem:[%s209_s2] sm:$0x1]  ;;  %s224_s30 = scalar_lea.vmem [#allocation4], %s1192_s1  ;;  %s1198_s11 = sld [smem:[#allocation3 + $0x13]] }
  0x45   :  { %v121_v42 = vsel %vm120_vm4, %v119_v39, %v103_v38  ;;  %v219_v59 = vld [vmem:[%s218_s4] sm:$0x1]  ;;  %s1199_s0 = sld [smem:[#allocation3 + $0x14]]  ;;  %s1200_s15 = sld [smem:[#allocation3 + $0x15]] }
  0x46   :  { %1673 = vmatpush3.bf16.msra.mxu0 %v2068_v16  ;;  %1697 = vmatpush3.bf16.msra.mxu1 %v2068_v16  ;;  %v123_v45 = vsel %vm122_vm5, %v121_v42, %v106_v41  ;;  %v253_v61 = vsel %vm114_vm1, %v210_v58, %v233_v57  ;;  %v222_v62 = vld [vmem:[%s221_s29] sm:$0x1]  ;;  %v239_v63 = vrot.slane %v219_v59, 5  ;;  %s227_s6 = scalar_lea.vmem [#allocation4], %s1193_s27  ;;  %s230_s7 = scalar_lea.vmem [#allocation4], %s1194_s28 }
  0x47   :  { %1674 = vmatprep.subr.bf16.mxu0 %v1965_v0  ;;  %1698 = vmatprep.subr.bf16.mxu1 %v1965_v0  ;;  %v125_v47 = vsel %vm124_vm6, %v123_v45, %v109_v44  ;;  %v254_v2 = vsel %vm116_vm2, %v253_v61, %v236_v60  ;;  %v225_v3 = vld [vmem:[%s224_s30] sm:$0x1]  ;;  %v242_v4 = vrot.slane %v222_v62, 4  ;;  %s339_s14 = scalar_lea.vmem [#allocation4], %s1196_s8  ;;  %s342_s16 = scalar_lea.vmem [#allocation4], %s1197_s9 }
  0x48   :  { %v127_v48 = vsel %vm126_vm7, %v125_v47, %v112_v46  ;;  %v255_v6 = vsel %vm118_vm3, %v254_v2, %v239_v63  ;;  %v228_v8 = vld [vmem:[%s227_s6] sm:$0x1]  ;;  %v245_v9 = vrot.slane %v225_v3, 3  ;;  %s336_s17 = scalar_lea.vmem [#allocation4], %s1195_s10  ;;  %s1201_s18 = sld [smem:[#allocation3 + $0x16]] }
  0x49   :  { %v256_v11 = vsel %vm120_vm4, %v255_v6, %v242_v4  ;;  %v231_v12 = vld [vmem:[%s230_s7] sm:$0x1]  ;;  %v248_v14 = vrot.slane %v228_v8, 2  ;;  %s1202_s20 = sld [smem:[#allocation3 + $0x17]]  ;;  %s1204_s24 = sld [smem:[#allocation3 + $0x19]] }
  0x4a   :  { %1676 = vmatpush3.bf16.msra.mxu0 %v2074_v19  ;;  %1700 = vmatpush3.bf16.msra.mxu1 %v2074_v19  ;;  %v257_v15 = vsel %vm122_vm5, %v256_v11, %v245_v9  ;;  %v251_v17 = vrot.slane %v231_v12, 1  ;;  %v340_v28 = vld [vmem:[%s339_s14] sm:$0x1]  ;;  %s345_s19 = scalar_lea.vmem [#allocation4], %s1198_s11  ;;  %s1205_s25 = sld [smem:[#allocation3 + $0x1a]] }
  0x4b   :  { %1677 = vmatprep.subr.bf16.mxu0 %v1965_v0  ;;  %1701 = vmatprep.subr.bf16.mxu1 %v1965_v0  ;;  %v258_v18 = vsel %vm124_vm6, %v257_v15, %v248_v14  ;;  %v343_v29 = vld [vmem:[%s342_s16] sm:$0x1]  ;;  %v360_v30 = vrot.slane %v340_v28, 7  ;;  %s348_s3 = scalar_lea.vmem [#allocation4], %s1199_s0  ;;  %s351_s21 = scalar_lea.vmem [#allocation4], %s1200_s15 }
  0x4c   :  { %v259_v20 = vsel %vm126_vm7, %v258_v18, %v251_v17  ;;  %v337_v31 = vld [vmem:[%s336_s17] sm:$0x1]  ;;  %v363_v33 = vrot.slane %v343_v29, 6  ;;  %s1203_s1 = sld [smem:[#allocation3 + $0x18]]  ;;  %s1206_s26 = sld [smem:[#allocation3 + $0x1b]] }
  0x4d   :  { %v346_v32 = vld [vmem:[%s345_s19] sm:$0x1]  ;;  %v380_v34 = vsel %vm114_vm1, %v337_v31, %v360_v30  ;;  %s1207_s2 = sld [smem:[#allocation3 + $0x1c]]  ;;  %s1208_s4 = sld [smem:[#allocation3 + $0x1d]] }
  0x4e   :  { %1679 = vmatpush3.bf16.msra.mxu0 %v2080_v22  ;;  %1703 = vmatpush3.bf16.msra.mxu1 %v2080_v22  ;;  %v349_v35 = vld [vmem:[%s348_s3] sm:$0x1]  ;;  %v366_v36 = vrot.slane %v346_v32, 5  ;;  %v381_v37 = vsel %vm116_vm2, %v380_v34, %v363_v33  ;;  %s354_s22 = scalar_lea.vmem [#allocation4], %s1201_s18  ;;  %s1209_s30 = sld [smem:[#allocation3 + $0x1e]] }
  0x4f   :  { %1680 = vmatprep.subr.bf16.mxu0 %v1965_v0  ;;  %1704 = vmatprep.subr.bf16.mxu1 %v1965_v0  ;;  %v352_v38 = vld [vmem:[%s351_s21] sm:$0x1]  ;;  %v369_v39 = vrot.slane %v349_v35, 4  ;;  %s357_s23 = scalar_lea.vmem [#allocation4], %s1202_s20  ;;  %s466_s27 = scalar_lea.vmem [#allocation4], %s1204_s24 }
  0x50   :  { %v382_v40 = vsel %vm118_vm3, %v381_v37, %v366_v36  ;;  %v355_v41 = vld [vmem:[%s354_s22] sm:$0x1]  ;;  %v372_v42 = vrot.slane %v352_v38, 3  ;;  %s469_s28 = scalar_lea.vmem [#allocation4], %s1205_s25  ;;  %s1210_s7 = sld [smem:[#allocation3 + $0x1f]] }
  0x51   :  { %v383_v43 = vsel %vm120_vm4, %v382_v40, %v369_v39  ;;  %v358_v44 = vld [vmem:[%s357_s23] sm:$0x1]  ;;  %v375_v45 = vrot.slane %v355_v41, 2  ;;  %s1212_s0 = sld [smem:[#allocation3 + $0x21]]  ;;  %s1213_s14 = sld [smem:[#allocation3 + $0x22]] }
  0x52   :  { %1682 = vmatpush3.bf16.msra.mxu0 %v2086_v25  ;;  %1706 = vmatpush3.bf16.msra.mxu1 %v2086_v25  ;;  %v384_v46 = vsel %vm122_vm5, %v383_v43, %v372_v42  ;;  %v378_v47 = vrot.slane %v358_v44, 1  ;;  %v467_v56 = vld [vmem:[%s466_s27] sm:$0x1]  ;;  %s463_s29 = scalar_lea.vmem [#allocation4], %s1203_s1  ;;  %s472_s6 = scalar_lea.vmem [#allocation4], %s1206_s26 }
  0x53   :  { %1707 = vmatprep.subr.bf16.mxu0 %v1965_v0  ;;  %1731 = vmatprep.subr.bf16.mxu1 %v1965_v0  ;;  %v470_v57 = vld [vmem:[%s469_s28] sm:$0x1]  ;;  %v487_v58 = vrot.slane %v467_v56, 7  ;;  %s475_s8 = scalar_lea.vmem [#allocation4], %s1207_s2  ;;  %s478_s9 = scalar_lea.vmem [#allocation4], %s1208_s4 }
  0x54   :  { %v464_v59 = vld [vmem:[%s463_s29] sm:$0x1]  ;;  %v490_v61 = vrot.slane %v470_v57, 6  ;;  %s481_s10 = scalar_lea.vmem [#allocation4], %s1209_s30  ;;  %s1211_s15 = sld [smem:[#allocation3 + $0x20]] }
  0x55   :  { %1412 = vmatmul.mubr.f32.vlgmr.msra.gmra.mrb[0].mxu0 %v68_v26  ;;  %v473_v60 = vld [vmem:[%s472_s6] sm:$0x1]  ;;  %v507_v62 = vsel %vm114_vm1, %v464_v59, %v487_v58  ;;  %s1214_s16 = sld [smem:[#allocation3 + $0x23]]  ;;  %s1215_s17 = sld [smem:[#allocation3 + $0x24]] }
  0x56   :  { %1709 = vmatpush3.bf16.msra.mxu0 %v2047_v5  ;;  %1481 = vmatprep.mubr.msk.f32.mxu0 %vm1966_vm0, %v1967_v1  ;;  %v476_v63 = vld [vmem:[%s475_s8] sm:$0x1]  ;;  %v493_v2 = vrot.slane %v473_v60, 5  ;;  %v508_v3 = vsel %vm116_vm2, %v507_v62, %v490_v61  ;;  %s484_s11 = scalar_lea.vmem [#allocation4], %s1210_s7  ;;  %s1216_s19 = sld [smem:[#allocation3 + $0x25]] }
  0x57   :  { %1710 = vmatprep.subr.bf16.mxu0 %v1965_v0  ;;  %v479_v4 = vld [vmem:[%s478_s9] sm:$0x1]  ;;  %v496_v6 = vrot.slane %v476_v63, 4  ;;  %s593_s18 = scalar_lea.vmem [#allocation4], %s1212_s0  ;;  %s596_s20 = scalar_lea.vmem [#allocation4], %s1213_s14 }
  0x58   :  { %v509_v8 = vsel %vm118_vm3, %v508_v3, %v493_v2  ;;  %v482_v9 = vld [vmem:[%s481_s10] sm:$0x1]  ;;  %v499_v11 = vrot.slane %v479_v4, 3  ;;  %s1217_s21 = sld [smem:[#allocation3 + $0x26]]  ;;  %s1218_s23 = sld [smem:[#allocation3 + $0x27]] }
  0x59   :  { %v510_v12 = vsel %vm120_vm4, %v509_v8, %v496_v6  ;;  %v485_v14 = vld [vmem:[%s484_s11] sm:$0x1]  ;;  %v502_v15 = vrot.slane %v482_v9, 2  ;;  %s1220_s2 = sld [smem:[#allocation3 + $0x29]]  ;;  %s1221_s27 = sld [smem:[#allocation3 + $0x2a]] }
  0x5a   :  { %1712 = vmatpush3.bf16.msra.mxu0 %v2050_v7  ;;  %v511_v17 = vsel %vm122_vm5, %v510_v12, %v499_v11  ;;  %v505_v18 = vrot.slane %v485_v14, 1  ;;  %v594_v29 = vld [vmem:[%s593_s18] sm:$0x1]  ;;  %s590_s3 = scalar_lea.vmem [#allocation4], %s1211_s15  ;;  %s1219_s4 = sld [smem:[#allocation3 + $0x28]] }
  0x5b   :  { %1713 = vmatprep.subr.bf16.mxu0 %v1965_v0  ;;  %v597_v30 = vld [vmem:[%s596_s20] sm:$0x1]  ;;  %v614_v31 = vrot.slane %v594_v29, 7  ;;  %s599_s22 = scalar_lea.vmem [#allocation4], %s1214_s16  ;;  %s602_s24 = scalar_lea.vmem [#allocation4], %s1215_s17 }
  0x5c   :  { %v591_v32 = vld [vmem:[%s590_s3] sm:$0x1]  ;;  %v617_v34 = vrot.slane %v597_v30, 6  ;;  %s605_s25 = scalar_lea.vmem [#allocation4], %s1216_s19  ;;  %s1222_s28 = sld [smem:[#allocation3 + $0x2b]] }
  0x5d   :  { %v600_v33 = vld [vmem:[%s599_s22] sm:$0x1]  ;;  %v634_v35 = vsel %vm114_vm1, %v591_v32, %v614_v31  ;;  %s1223_s29 = sld [smem:[#allocation3 + $0x2c]]  ;;  %s1224_s6 = sld [smem:[#allocation3 + $0x2d]] }
  0x5e   :  { %1715 = vmatpush3.bf16.msra.mxu0 %v2056_v10  ;;  %v603_v36 = vld [vmem:[%s602_s24] sm:$0x1]  ;;  %v620_v37 = vrot.slane %v600_v33, 5  ;;  %v635_v38 = vsel %vm116_vm2, %v634_v35, %v617_v34  ;;  %s608_s1 = scalar_lea.vmem [#allocation4], %s1217_s21  ;;  %s611_s26 = scalar_lea.vmem [#allocation4], %s1218_s23 }
  0x5f   :  { %1716 = vmatprep.subr.bf16.mxu0 %v1965_v0  ;;  %v606_v39 = vld [vmem:[%s605_s25] sm:$0x1]  ;;  %v623_v40 = vrot.slane %v603_v36, 4  ;;  %s720_s30 = scalar_lea.vmem [#allocation4], %s1220_s2  ;;  %s723_s7 = scalar_lea.vmem [#allocation4], %s1221_s27 }
  0x60   :  { %v636_v41 = vsel %vm118_vm3, %v635_v38, %v620_v37  ;;  %v609_v42 = vld [vmem:[%s608_s1] sm:$0x1]  ;;  %v626_v43 = vrot.slane %v606_v39, 3  ;;  %s717_s8 = scalar_lea.vmem [#allocation4], %s1219_s4  ;;  %s1225_s9 = sld [smem:[#allocation3 + $0x2e]] }
  0x61   :  { %v637_v44 = vsel %vm120_vm4, %v636_v41, %v623_v40  ;;  %s1226_s11 = sld [smem:[#allocation3 + $0x2f]]  ;;  %s1228_s17 = sld [smem:[#allocation3 + $0x31]] }
  0x62   :  { %1718 = vmatpush3.bf16.msra.mxu0 %v2062_v13  ;;  %s726_s10 = scalar_lea.vmem [#allocation4], %s1222_s28  ;;  %s1229_s18 = sld [smem:[#allocation3 + $0x32]] }
  0x63   :  { %1719 = vmatprep.subr.bf16.mxu0 %v1965_v0  ;;  %s729_s0 = scalar_lea.vmem [#allocation4], %s1223_s29  ;;  %s732_s14 = scalar_lea.vmem [#allocation4], %s1224_s6 }
  0x64   :  { %v733_v57 = vld [vmem:[%s732_s14] sm:$0x1]  ;;  %s1227_s19 = sld [smem:[#allocation3 + $0x30]]  ;;  %s1230_s20 = sld [smem:[#allocation3 + $0x33]] }
  0x65   :  { %v753_v61 = vrot.slane %v733_v57, 3  ;;  %s1231_s3 = sld [smem:[#allocation3 + $0x34]]  ;;  %s1232_s22 = sld [smem:[#allocation3 + $0x35]] }
  0x66   :  { %1721 = vmatpush3.bf16.msra.mxu0 %v2068_v16  ;;  %s735_s15 = scalar_lea.vmem [#allocation4], %s1225_s9  ;;  %s1233_s25 = sld [smem:[#allocation3 + $0x36]] }
  0x67   :  { %1722 = vmatprep.subr.bf16.mxu0 %v1965_v0  ;;  %v736_v60 = vld [vmem:[%s735_s15] sm:$0x1]  ;;  %s738_s16 = scalar_lea.vmem [#allocation4], %s1226_s11  ;;  %s847_s21 = scalar_lea.vmem [#allocation4], %s1228_s17 }
  0x68   :  { %v739_v63 = vld [vmem:[%s738_s16] sm:$0x1]  ;;  %v756_v2 = vrot.slane %v736_v60, 2  ;;  %s850_s23 = scalar_lea.vmem [#allocation4], %s1229_s18  ;;  %s1236_s29 = sld [smem:[#allocation3 + $0x39]] }
  0x69   :  { %v759_v4 = vrot.slane %v739_v63, 1  ;;  %s1235_s6 = sld [smem:[#allocation3 + $0x38]]  ;;  %s1241_s14 = sld [smem:[#allocation3 + $0x3e]] }
  0x6a   :  { %1724 = vmatpush3.bf16.msra.mxu0 %v2074_v19  ;;  %s844_s24 = scalar_lea.vmem [#allocation4], %s1227_s19  ;;  %s853_s1 = scalar_lea.vmem [#allocation4], %s1230_s20 }
  0x6b   :  { %1725 = vmatprep.subr.bf16.mxu0 %v1965_v0  ;;  %s856_s2 = scalar_lea.vmem [#allocation4], %s1231_s3  ;;  %s859_s27 = scalar_lea.vmem [#allocation4], %s1232_s22 }
  0x6c   :  { %v860_v30 = vld [vmem:[%s859_s27] sm:$0x1]  ;;  %s862_s4 = scalar_lea.vmem [#allocation4], %s1233_s25  ;;  %s1242_s16 = sld [smem:[#allocation3 + $0x3f]] }
  0x6d   :  { %v863_v33 = vld [vmem:[%s862_s4] sm:$0x1]  ;;  %v880_v34 = vrot.slane %v860_v30, 3  ;;  %s1968_s3 = smov [#allocation9]  }
  0x6e   :  { %1727 = vmatpush3.bf16.msra.mxu0 %v2080_v22  ;;  %v883_v37 = vrot.slane %v863_v33, 2  ;;  %s974_s9 = scalar_lea.vmem [#allocation4], %s1236_s29 }
  0x6f   :  { %1728 = vmatprep.subr.bf16.mxu0 %v1965_v0  ;;  %s989_s19 = scalar_lea.vmem [#allocation4], %s1241_s14 }
  0x72   :  { %1730 = vmatpush3.bf16.msra.mxu0 %v2086_v25  ;;  %s992_s20 = scalar_lea.vmem [#allocation4], %s1242_s16 }
  0x73   :  { %1755 = vmatprep.subr.bf16.mxu0 %v1965_v0 }
 0x128   :  { %v194_v50 = vpop.f32.mrb[0].mxu0 }
 0x129   :  { %v198_v51 = vadd.f32 %v194_v50, %v127_v48  ;;  %v1413_v52 = vpop.f32.mrb[1].mxu0  ;;  %v385_v48 = vsel %vm124_vm6, %v384_v46, %v375_v45  ;;  %v612_v45 = vld [vmem:[%s611_s26] sm:$0x1]  ;;  %v629_v46 = vrot.slane %v609_v42, 2  ;;  %s1234_s26 = sld [smem:[#allocation3 + $0x37]] }
 0x12a   :  { %v386_v50 = vsel %vm126_vm7, %v385_v48, %v378_v47  ;;  %v638_v47 = vsel %vm122_vm5, %v637_v44, %v626_v43  ;;  %v632_v48 = vrot.slane %v612_v45, 1 }
 0x12b   :  { %v205_v53 = vadd.f32 %v2126_v49, %v198_v51 }
 0x12d   :  { %1860 = vtanh.f32 %v205_v53 }
 0x12f   :  { %s865_s28 = scalar_lea.vmem [#allocation4], %s1234_s26 }
 0x130   :  { %v866_v36 = vld [vmem:[%s865_s28] sm:$0x1] }
 0x131   :  { %v886_v39 = vrot.slane %v866_v36, 1 }
 0x137   :  { %v1861_v54 = vpop.eup %1860 }
 0x138   :  { %207 = vst [vmem:[#allocation9] sm:$0xff] %v1861_v54  ;;  %1447 = vmatmul.mubr.f32.vlgmr.msra.gmra.mrb[0].mxu1 %v1861_v54 }
 0x139   :  { %1733 = vmatpush3.bf16.msra.mxu1 %v2047_v5  ;;  %1516 = vmatprep.mubr.msk.f32.mxu1 %vm1966_vm0, %v1967_v1 }
 0x13a   :  { %1734 = vmatprep.subr.bf16.mxu1 %v1965_v0 }
 0x13d   :  { %1736 = vmatpush3.bf16.msra.mxu1 %v2050_v7 }
 0x13e   :  { %1737 = vmatprep.subr.bf16.mxu1 %v1965_v0 }
 0x141   :  { %1739 = vmatpush3.bf16.msra.mxu1 %v2056_v10 }
 0x142   :  { %1740 = vmatprep.subr.bf16.mxu1 %v1965_v0 }
 0x145   :  { %1742 = vmatpush3.bf16.msra.mxu1 %v2062_v13 }
 0x146   :  { %1743 = vmatprep.subr.bf16.mxu1 %v1965_v0 }
 0x149   :  { %1745 = vmatpush3.bf16.msra.mxu1 %v2068_v16 }
 0x14a   :  { %1746 = vmatprep.subr.bf16.mxu1 %v1965_v0 }
 0x14d   :  { %1748 = vmatpush3.bf16.msra.mxu1 %v2074_v19 }
 0x14e   :  { %1749 = vmatprep.subr.bf16.mxu1 %v1965_v0 }
 0x151   :  { %1751 = vmatpush3.bf16.msra.mxu1 %v2080_v22 }
 0x152   :  { %1752 = vmatprep.subr.bf16.mxu1 %v1965_v0 }
 0x155   :  { %1754 = vmatpush3.bf16.msra.mxu1 %v2086_v25 }
 0x156   :  { %1779 = vmatprep.subr.bf16.mxu1 %v1965_v0 }
 0x20b   :  { %v326_v21 = vpop.f32.mrb[0].mxu1 }
 0x20c   :  { %v330_v23 = vadd.f32 %v326_v21, %v259_v20  ;;  %v1448_v24 = vpop.f32.mrb[1].mxu1  ;;  %v512_v20 = vsel %vm124_vm6, %v511_v17, %v502_v15  ;;  %v848_v17 = vld [vmem:[%s847_s21] sm:$0x1]  ;;  %s1102_s21 = sshll.u32 %s1968_s3, 4  ;;  %s1103_s21 = int_to_ptr.vmem [resolvable:$true] %s1102_s21 }
 0x20d   :  { %v513_v21 = vsel %vm126_vm7, %v512_v20, %v505_v18  ;;  %v851_v18 = vld [vmem:[%s850_s23] sm:$0x1]  ;;  %v868_v20 = vrot.slane %v848_v17, 7  ;;  %s1930_s22 = scalar_lea.vmem %s1103_s21, 1024  ;;  %p1935_p6 = scmp.lt.s32.totalorder %s1103_s21, %s1103_s21 }
 0x20e   :  { %v331_v26 = vadd.f32 %v2126_v49, %v330_v23  ;;  %p1931_p5 = scmp.ne.s32.totalorder %s1103_s21, %s1930_s22  ;;  %p1936_p7 = scmp.lt.s32.totalorder %s1930_s22, %s1930_s22 }
 0x210   :  { %1862 = vtanh.f32 %v331_v26  ;;  %p1937_p8 = por %p1936_p7, %p1935_p6 }
 0x212   :  { %p1938_p9 = pnand %p1937_p8, %p1931_p5 }
 0x21a   :  { %v1863_v27 = vpop.eup %1862 }
 0x21b   :  { %334 = vst [vmem:[#allocation9 + $0x8] sm:$0xff] %v1863_v27  ;;  %1482 = vmatmul.mubr.f32.vlgmr.msra.gmra.mrb[2].mxu0 %v1863_v27 }
 0x21c   :  { %1757 = vmatpush3.bf16.msra.mxu0 %v2047_v5  ;;  %1551 = vmatprep.mubr.msk.f32.mxu0 %vm1966_vm0, %v1967_v1 }
 0x21d   :  { %1758 = vmatprep.subr.bf16.mxu0 %v1965_v0 }
 0x220   :  { %1760 = vmatpush3.bf16.msra.mxu0 %v2050_v7 }
 0x221   :  { %1761 = vmatprep.subr.bf16.mxu0 %v1965_v0 }
 0x224   :  { %1763 = vmatpush3.bf16.msra.mxu0 %v2056_v10 }
 0x225   :  { %1764 = vmatprep.subr.bf16.mxu0 %v1965_v0 }
 0x228   :  { %1766 = vmatpush3.bf16.msra.mxu0 %v2062_v13 }
 0x229   :  { %1767 = vmatprep.subr.bf16.mxu0 %v1965_v0 }
 0x22c   :  { %1769 = vmatpush3.bf16.msra.mxu0 %v2068_v16 }
 0x22d   :  { %1770 = vmatprep.subr.bf16.mxu0 %v1965_v0 }
 0x230   :  { %1772 = vmatpush3.bf16.msra.mxu0 %v2074_v19 }
 0x231   :  { %1773 = vmatprep.subr.bf16.mxu0 %v1965_v0 }
 0x234   :  { %1775 = vmatpush3.bf16.msra.mxu0 %v2080_v22 }
 0x235   :  { %1776 = vmatprep.subr.bf16.mxu0 %v1965_v0 }
 0x238   :  { %1778 = vmatpush3.bf16.msra.mxu0 %v2086_v25 }
 0x239   :  { %1803 = vmatprep.subr.bf16.mxu0 %v1965_v0 }
 0x2ee   :  { %v453_v51 = vpop.f32.mrb[2].mxu0 }
 0x2ef   :  { %v457_v52 = vadd.f32 %v453_v51, %v386_v50  ;;  %v1483_v53 = vpop.f32.mrb[3].mxu0  ;;  %v639_v50 = vsel %vm124_vm6, %v638_v47, %v629_v46  ;;  %v975_v47 = vld [vmem:[%s974_s9] sm:$0x1] }
 0x2f0   :  { %v640_v51 = vsel %vm126_vm7, %v639_v50, %v632_v48  ;;  %v995_v50 = vrot.slane %v975_v47, 7 }
 0x2f1   :  { %v458_v54 = vadd.f32 %v2126_v49, %v457_v52 }
 0x2f3   :  { %1864 = vtanh.f32 %v458_v54 }
 0x2fd   :  { %v1865_v55 = vpop.eup %1864 }
 0x2fe   :  { %461 = vst [vmem:[#allocation9 + $0x10] sm:$0xff] %v1865_v55  ;;  %1517 = vmatmul.mubr.f32.vlgmr.msra.gmra.mrb[2].mxu1 %v1865_v55 }
 0x2ff   :  { %1781 = vmatpush3.bf16.msra.mxu1 %v2047_v5  ;;  %1586 = vmatprep.mubr.msk.f32.mxu1 %vm1966_vm0, %v1967_v1 }
 0x300   :  { %1782 = vmatprep.subr.bf16.mxu1 %v1965_v0 }
 0x303   :  { %1784 = vmatpush3.bf16.msra.mxu1 %v2050_v7 }
 0x304   :  { %1785 = vmatprep.subr.bf16.mxu1 %v1965_v0 }
 0x307   :  { %1787 = vmatpush3.bf16.msra.mxu1 %v2056_v10 }
 0x308   :  { %1788 = vmatprep.subr.bf16.mxu1 %v1965_v0 }
 0x30b   :  { %1790 = vmatpush3.bf16.msra.mxu1 %v2062_v13 }
 0x30c   :  { %1791 = vmatprep.subr.bf16.mxu1 %v1965_v0 }
 0x30f   :  { %1793 = vmatpush3.bf16.msra.mxu1 %v2068_v16 }
 0x310   :  { %1794 = vmatprep.subr.bf16.mxu1 %v1965_v0 }
 0x313   :  { %1796 = vmatpush3.bf16.msra.mxu1 %v2074_v19 }
 0x314   :  { %1797 = vmatprep.subr.bf16.mxu1 %v1965_v0 }
 0x317   :  { %1799 = vmatpush3.bf16.msra.mxu1 %v2080_v22 }
 0x318   :  { %1800 = vmatprep.subr.bf16.mxu1 %v1965_v0 }
 0x31b   :  { %1802 = vmatpush3.bf16.msra.mxu1 %v2086_v25 }
 0x31c   :  { %1827 = vmatprep.subr.bf16.mxu1 %v1965_v0 }
 0x3d1   :  { %v580_v23 = vpop.f32.mrb[2].mxu1 }
 0x3d2   :  { %v584_v24 = vadd.f32 %v580_v23, %v513_v21  ;;  %v1518_v26 = vpop.f32.mrb[3].mxu1  ;;  %v845_v21 = vld [vmem:[%s844_s24] sm:$0x1] }
 0x3d3   :  { %v854_v23 = vld [vmem:[%s853_s1] sm:$0x1]  ;;  %v888_v26 = vsel %vm114_vm1, %v845_v21, %v868_v20 }
 0x3d4   :  { %v585_v27 = vadd.f32 %v2126_v49, %v584_v24  ;;  %v871_v24 = vrot.slane %v851_v18, 6 }
 0x3d6   :  { %1866 = vtanh.f32 %v585_v27  ;;  %v857_v27 = vld [vmem:[%s856_s2] sm:$0x1]  ;;  %v889_v29 = vsel %vm116_vm2, %v888_v26, %v871_v24 }
 0x3d7   :  { %v877_v31 = vrot.slane %v857_v27, 4 }
 0x3e0   :  { %v1867_v28 = vpop.eup %1866 }
 0x3e1   :  { %588 = vst [vmem:[#allocation9 + $0x18] sm:$0xff] %v1867_v28  ;;  %1552 = vmatmul.mubr.f32.vlgmr.msra.gmra.mrb[4].mxu0 %v1867_v28  ;;  %v874_v28 = vrot.slane %v854_v23, 5 }
 0x3e2   :  { %1805 = vmatpush3.bf16.msra.mxu0 %v2047_v5  ;;  %1621 = vmatprep.mubr.msk.f32.mxu0 %vm1966_vm0, %v1967_v1 }
 0x3e3   :  { %1806 = vmatprep.subr.bf16.mxu0 %v1965_v0  ;;  %v890_v32 = vsel %vm118_vm3, %v889_v29, %v874_v28 }
 0x3e4   :  { %v891_v35 = vsel %vm120_vm4, %v890_v32, %v877_v31 }
 0x3e5   :  { %v892_v38 = vsel %vm122_vm5, %v891_v35, %v880_v34 }
 0x3e6   :  { %1808 = vmatpush3.bf16.msra.mxu0 %v2050_v7  ;;  %v893_v40 = vsel %vm124_vm6, %v892_v38, %v883_v37 }
 0x3e7   :  { %1809 = vmatprep.subr.bf16.mxu0 %v1965_v0  ;;  %v894_v41 = vsel %vm126_vm7, %v893_v40, %v886_v39 }
 0x3ea   :  { %1811 = vmatpush3.bf16.msra.mxu0 %v2056_v10 }
 0x3eb   :  { %1812 = vmatprep.subr.bf16.mxu0 %v1965_v0 }
 0x3ee   :  { %1814 = vmatpush3.bf16.msra.mxu0 %v2062_v13 }
 0x3ef   :  { %1815 = vmatprep.subr.bf16.mxu0 %v1965_v0 }
 0x3f2   :  { %1817 = vmatpush3.bf16.msra.mxu0 %v2068_v16 }
 0x3f3   :  { %1818 = vmatprep.subr.bf16.mxu0 %v1965_v0 }
 0x3f6   :  { %1820 = vmatpush3.bf16.msra.mxu0 %v2074_v19 }
 0x3f7   :  { %1821 = vmatprep.subr.bf16.mxu0 %v1965_v0 }
 0x3fa   :  { %1823 = vmatpush3.bf16.msra.mxu0 %v2080_v22 }
 0x3fb   :  { %1824 = vmatprep.subr.bf16.mxu0 %v1965_v0 }
 0x3fe   :  { %1826 = vmatpush3.bf16.msra.mxu0 %v2086_v25 }
 0x4b4   :  { %v707_v52 = vpop.f32.mrb[4].mxu0 }
 0x4b5   :  { %v711_v53 = vadd.f32 %v707_v52, %v640_v51  ;;  %v1553_v54 = vpop.f32.mrb[5].mxu0 }
 0x4b7   :  { %v712_v55 = vadd.f32 %v2126_v49, %v711_v53 }
 0x4b9   :  { %1868 = vtanh.f32 %v712_v55 }
 0x4c3   :  { %v1869_v56 = vpop.eup %1868 }
 0x4c4   :  { %715 = vst [vmem:[#allocation9 + $0x20] sm:$0xff] %v1869_v56  ;;  %1587 = vmatmul.mubr.f32.vlgmr.msra.gmra.mrb[4].mxu1 %v1869_v56 }
 0x4c5   :  { %1829 = vmatpush3.bf16.msra.mxu1 %v2047_v5  ;;  %1656 = vmatprep.mubr.msk.f32.mxu1 %vm1966_vm0, %v1967_v1  ;;  %v721_v1 = vld [vmem:[%s720_s30] sm:$0x1]  ;;  %s1237_s30 = sld [smem:[#allocation3 + $0x3a]] }
 0x4c6   :  { %1830 = vmatprep.subr.bf16.mxu1 %v1965_v0  ;;  %v724_v5 = vld [vmem:[%s723_s7] sm:$0x1]  ;;  %s1238_s7 = sld [smem:[#allocation3 + $0x3b]] }
 0x4c9   :  { %1832 = vmatpush3.bf16.msra.mxu1 %v2050_v7  ;;  %v741_v7 = vrot.slane %v721_v1, 7 }
 0x4ca   :  { %1833 = vmatprep.subr.bf16.mxu1 %v1965_v0 }
 0x4cb   :  { %s977_s11 = scalar_lea.vmem [#allocation4], %s1237_s30 }
 0x4cc   :  { %v978_v48 = vld [vmem:[%s977_s11] sm:$0x1]  ;;  %s980_s15 = scalar_lea.vmem [#allocation4], %s1238_s7 }
 0x4cd   :  { %1835 = vmatpush3.bf16.msra.mxu1 %v2056_v10  ;;  %v718_v10 = vld [vmem:[%s717_s8] sm:$0x1]  ;;  %s1239_s8 = sld [smem:[#allocation3 + $0x3c]]  ;;  %v998_v53 = vrot.slane %v978_v48, 6 }
 0x4ce   :  { %1836 = vmatprep.subr.bf16.mxu1 %v1965_v0  ;;  %v981_v52 = vld [vmem:[%s980_s15] sm:$0x1] }
 0x4cf   :  { %v1001_v56 = vrot.slane %v981_v52, 5 }
 0x4d1   :  { %1838 = vmatpush3.bf16.msra.mxu1 %v2062_v13  ;;  %v727_v13 = vld [vmem:[%s726_s10] sm:$0x1]  ;;  %s1240_s10 = sld [smem:[#allocation3 + $0x3d]] }
 0x4d2   :  { %1839 = vmatprep.subr.bf16.mxu1 %v1965_v0 }
 0x4d3   :  { %s983_s17 = scalar_lea.vmem [#allocation4], %s1239_s8 }
 0x4d4   :  { %v984_v55 = vld [vmem:[%s983_s17] sm:$0x1] }
 0x4d5   :  { %1841 = vmatpush3.bf16.msra.mxu1 %v2068_v16  ;;  %v744_v16 = vrot.slane %v724_v5, 6 }
 0x4d6   :  { %1842 = vmatprep.subr.bf16.mxu1 %v1965_v0 }
 0x4d7   :  { %s986_s18 = scalar_lea.vmem [#allocation4], %s1240_s10 }
 0x4d8   :  { %v987_v5 = vld [vmem:[%s986_s18] sm:$0x1] }
 0x4d9   :  { %1844 = vmatpush3.bf16.msra.mxu1 %v2074_v19  ;;  %v730_v19 = vld [vmem:[%s729_s0] sm:$0x1]  ;;  %s971_s0 = scalar_lea.vmem [#allocation4], %s1235_s6 }
 0x4da   :  { %1845 = vmatprep.subr.bf16.mxu1 %v1965_v0  ;;  %v750_v58 = vrot.slane %v730_v19, 4  ;;  %v972_v51 = vld [vmem:[%s971_s0] sm:$0x1] }
 0x4db   :  { %v1015_v54 = vsel %vm114_vm1, %v972_v51, %v995_v50  ;;  %v993_v19 = vld [vmem:[%s992_s20] sm:$0x1] }
 0x4dc   :  { %v1016_v1 = vsel %vm116_vm2, %v1015_v54, %v998_v53  ;;  %v1013_v57 = vrot.slane %v993_v19, 1 }
 0x4dd   :  { %1847 = vmatpush3.bf16.msra.mxu1 %v2080_v22  ;;  %v747_v22 = vrot.slane %v727_v13, 5  ;;  %v990_v13 = vld [vmem:[%s989_s19] sm:$0x1] }
 0x4de   :  { %1848 = vmatprep.subr.bf16.mxu1 %v1965_v0  ;;  %v761_v0 = vsel %vm114_vm1, %v718_v10, %v741_v7  ;;  %v1004_v7 = vrot.slane %v984_v55, 4  ;;  %v1017_v10 = vsel %vm118_vm3, %v1016_v1, %v1001_v56 }
 0x4e1   :  { %1850 = vmatpush3.bf16.msra.mxu1 %v2086_v25  ;;  %v762_v25 = vsel %vm116_vm2, %v761_v0, %v744_v16  ;;  %v1007_v16 = vrot.slane %v987_v5, 3  ;;  %v1018_v0 = vsel %vm120_vm4, %v1017_v10, %v1004_v7 }
 0x4e2   :  { %v763_v59 = vsel %vm118_vm3, %v762_v25, %v747_v22  ;;  %v1010_v22 = vrot.slane %v990_v13, 2 }
 0x4e3   :  { %v764_v62 = vsel %vm120_vm4, %v763_v59, %v750_v58  ;;  %v1019_v25 = vsel %vm122_vm5, %v1018_v0, %v1007_v16 }
 0x4e4   :  { %v765_v3 = vsel %vm122_vm5, %v764_v62, %v753_v61  ;;  %v1020_v58 = vsel %vm124_vm6, %v1019_v25, %v1010_v22 }
 0x4e5   :  { %v766_v6 = vsel %vm124_vm6, %v765_v3, %v756_v2  ;;  %v1021_v59 = vsel %vm126_vm7, %v1020_v58, %v1013_v57 }
 0x4e6   :  { %v767_v8 = vsel %vm126_vm7, %v766_v6, %v759_v4 }
 0x597   :  { %v834_v9 = vpop.f32.mrb[4].mxu1 }
 0x598   :  { %v838_v11 = vadd.f32 %v834_v9, %v767_v8  ;;  %v1588_v12 = vpop.f32.mrb[5].mxu1 }
 0x59a   :  { %v839_v14 = vadd.f32 %v2126_v49, %v838_v11 }
 0x59c   :  { %1870 = vtanh.f32 %v839_v14 }
 0x5a6   :  { %v1871_v15 = vpop.eup %1870 }
 0x5a7   :  { %842 = vst [vmem:[#allocation9 + $0x28] sm:$0xff] %v1871_v15  ;;  %1622 = vmatmul.mubr.f32.vlgmr.msra.gmra.mrb[6].mxu0 %v1871_v15 }
 0x67a   :  { %v961_v42 = vpop.f32.mrb[6].mxu0 }
 0x67b   :  { %v965_v43 = vadd.f32 %v961_v42, %v894_v41  ;;  %v1623_v44 = vpop.f32.mrb[7].mxu0 }
 0x67d   :  { %v966_v45 = vadd.f32 %v2126_v49, %v965_v43 }
 0x67f   :  { %1872 = vtanh.f32 %v966_v45 }
 0x689   :  { %v1873_v46 = vpop.eup %1872 }
 0x68a   :  { %969 = vst [vmem:[#allocation9 + $0x30] sm:$0xff] %v1873_v46  ;;  %1657 = vmatmul.mubr.f32.vlgmr.msra.gmra.mrb[6].mxu1 %v1873_v46 }
 0x75d   :  { %v1088_v60 = vpop.f32.mrb[6].mxu1 }
 0x75e   :  { %v1092_v61 = vadd.f32 %v1088_v60, %v1021_v59  ;;  %v1658_v62 = vpop.f32.mrb[7].mxu1 }
 0x760   :  { %v1093_v63 = vadd.f32 %v2126_v49, %v1092_v61 }
 0x762   :  { %1874 = vtanh.f32 %v1093_v63 }
 0x76c   :  { %v1875_v2 = vpop.eup %1874 }
 0x76d   :  { %1096 = vst [vmem:[#allocation9 + $0x38] sm:$0xff] %v1875_v2 }
 0x76e   :  { %1941 = shalt.err (!%p1938_p9)
}
 0x76f   :  { %s1942_s25 = scalar_lea.hbm %s2293_s5, 1024 }
 0x770   :  { %p1943_p10 = scmp.ne.s32.totalorder %s2293_s5, %s1942_s25  ;;  %p1946_p11 = scmp.lt.u32.totalorder %s1942_s25, %s2293_s5 }
 0x772   :  { %p1948_p12 = pnand %p1946_p11, %p1943_p10 }
 0x774   :  { %1951 = shalt.err (!%p1948_p12)
}
 0x775   :  { %1108 = dma.vmem_to_hbm [thread:$0]  %s1103_s21, 1024, %s2293_s5, [#allocation6], %s1962_s12, %s1962_s12, %s1963_s13  }
 0x776   :  { %1958 = dma.done.wait [#allocation6], 1024  }
 0x777   :  { %1959 = vsyncadd [#allocation6], 4294966272 }
 0x778   :  { %1112 = vsyncpa [#allocation5], 1 }
 0x779   :  { %1113 = vsyncpa [#allocation8], 1 }
 0x77a   :  { %1114 = vsyncpa [#allocation6], 1 }

</bundles_post_ra>
